<compile_context>
chip_gen: v7x
topology: tpu7x:2x2x1
jax: 0.10.0
libtpu: 0.0.40
codegen_flags: <defaults>
</compile_context>

<pallas_src>
import jax
import jax.numpy as jnp
from jax import lax
from jax.experimental import pallas as pl
from jax.experimental.pallas import tpu as pltpu

DIM_EMBEDDING = 100
LSTM_HIDDEN = 50
LANE = 128
SUBLANE = 8


def _round_up(x, m):
    return (x + m - 1) // m * m


def lstm_recurrence_kernel(gx_ref, whh_ref, hs_ref):
    """Sequential LSTM recurrence over the full sequence, resident in VMEM.

    gx_ref : (T, BP, 4*HP) f32   precomputed x_t @ W_ih + (b_ih + b_hh),
                                 gate order (i, f, o, g), lane- & sublane-padded
    whh_ref: (HP, 4*HP)    bf16  hidden->hidden weights, fused + gate-padded
    hs_ref : (T, BP, HP)   f32   hidden state h_t for every step (tile-aligned)
    """
    T, BP, _ = gx_ref.shape
    HP = hs_ref.shape[2]

    def step(t, carry):
        h, c = carry
        # One fused gate matmul per step; bf16 operands, f32 accumulate.
        gates = gx_ref[t] + jnp.dot(h.astype(jnp.bfloat16), whh_ref[...],
                                    preferred_element_type=jnp.float32)  # [BP, 4*HP]
        # Gate order (i, f, o, g): one sigmoid slab + one tanh for g.
        ifo = jax.nn.sigmoid(gates[:, :3 * HP])
        g_g = jnp.tanh(gates[:, 3 * HP:])
        i_g = ifo[:, 0 * HP:1 * HP]
        f_g = ifo[:, 1 * HP:2 * HP]
        o_g = ifo[:, 2 * HP:3 * HP]
        c_new = f_g * c + i_g * g_g
        h_new = o_g * jnp.tanh(c_new)
        hs_ref[t] = h_new
        return h_new, c_new

    h0 = jnp.zeros((BP, HP), jnp.float32)
    c0 = jnp.zeros((BP, HP), jnp.float32)
    lax.fori_loop(0, T, step, (h0, c0), unroll=True)


@jax.jit
def simple_lstm_forward(sentence, params):
    """sentence: int32 [B, T] token ids. Returns tag_space [B, T, TAGS] (f32)."""
    emb_proj = params["emb_proj"]    # [V, 4*HP] f32 : fused embedding x W_ih + bias
    whh = params["whh_kernel"]       # [HP, 4*HP] bf16
    wout = params["wout_kernel"]     # [HP, TAGS]
    bout = params["bout_kernel"]     # [TAGS]

    B, T = sentence.shape
    HP = whh.shape[0]
    BP = max(_round_up(B, SUBLANE), SUBLANE)

    # Time-major gather of the fused table: this IS the whole input projection.
    gates_x = emb_proj[sentence.T]                                    # [T, B, 4*HP]
    gates_x = jnp.pad(gates_x, ((0, 0), (0, BP - B), (0, 0)))         # [T, BP, 4*HP]

    # Serial part only: single pallas_call, empty grid, everything VMEM-resident
    # (gates_x 128 KB + whh 128 KB + hs 32 KB << any generation's VMEM).
    hs = pl.pallas_call(
        lstm_recurrence_kernel,
        out_shape=jax.ShapeDtypeStruct((T, BP, HP), jnp.float32),
        in_specs=[pl.BlockSpec(memory_space=pltpu.MemorySpace.VMEM),
                  pl.BlockSpec(memory_space=pltpu.MemorySpace.VMEM)],
        out_specs=pl.BlockSpec(memory_space=pltpu.MemorySpace.VMEM),
    )(gates_x, whh)

    # Hoisted hidden2tag: one [T*B, HP] x [HP, TAGS] matmul; transpose back to
    # batch-first is absorbed into the einsum. Padded batch rows sliced off.
    return jnp.einsum("tbh,hk->btk", hs[:, :B, :], wout,
                      preferred_element_type=jnp.float32) + bout      # [B, T, TAGS]


def init_params(key, vocab_size, tagset_size, embedding_dim=DIM_EMBEDDING,
                hidden_dim=LSTM_HIDDEN):
    """Deterministic parameter init matching the PyTorch module's shapes."""
    k_emb, k_wih, k_whh, k_bih, k_bhh, k_wo, k_bo = jax.random.split(key, 7)
    E, H = embedding_dim, hidden_dim
    HP = _round_up(H, LANE)                       # per-gate lane padding: 50 -> 128
    bound = 1.0 / jnp.sqrt(jnp.float32(H))

    emb_w = jax.random.normal(k_emb, (vocab_size, E), jnp.float32)
    emb_w = emb_w.at[0].set(0.0)                  # padding_idx=0 -> zero row

    # PyTorch-layout weights (used for the pure-JAX reference as well).
    # torch gate row order: i, f, g, o.
    W_ih = jax.random.uniform(k_wih, (4 * H, E), jnp.float32, -bound, bound)
    W_hh = jax.random.uniform(k_whh, (4 * H, H), jnp.float32, -bound, bound)
    b_ih = jax.random.uniform(k_bih, (4 * H,), jnp.float32, -bound, bound)
    b_hh = jax.random.uniform(k_bhh, (4 * H,), jnp.float32, -bound, bound)
    W_out = jax.random.uniform(k_wo, (tagset_size, H), jnp.float32, -bound, bound)
    b_out = jax.random.uniform(k_bo, (tagset_size,), jnp.float32, -bound, bound)

    # Kernel layout: gates fused along the last axis in order (i, f, o, g),
    # each gate zero-padded to a full 128-lane block; weights pre-transposed
    # for x @ W. Padded lanes/rows are zero -> they never contribute and the
    # padded c/h lanes provably stay zero.
    torch_gate_for_slot = (0, 1, 3, 2)            # kernel slots hold (i, f, o, g)
    wih_k = jnp.zeros((E, 4 * HP), jnp.float32)
    whh_k = jnp.zeros((HP, 4 * HP), jnp.float32)
    b_k = jnp.zeros((4 * HP,), jnp.float32)
    b_sum = b_ih + b_hh
    for slot, tg in enumerate(torch_gate_for_slot):
        wih_k = wih_k.at[:, slot * HP:slot * HP + H].set(W_ih[tg * H:(tg + 1) * H, :].T)
        whh_k = whh_k.at[:H, slot * HP:slot * HP + H].set(W_hh[tg * H:(tg + 1) * H, :].T)
        b_k = b_k.at[slot * HP:slot * HP + H].set(b_sum[tg * H:(tg + 1) * H])
    wout_k = jnp.zeros((HP, tagset_size), jnp.float32).at[:H, :].set(W_out.T)

    # Fused embedding x W_ih (+bias) lookup table: [V, 4*HP]. Row 0 (padding
    # token, zero embedding) correctly becomes just the bias, matching torch.
    emb_proj = emb_w @ wih_k + b_k

    return {
        "emb_w": emb_w,
        # PyTorch layout (reference)
        "W_ih": W_ih, "W_hh": W_hh, "b_ih": b_ih, "b_hh": b_hh,
        "W_out": W_out, "b_out": b_out,
        # Kernel layout (fused + padded)
        "emb_proj": emb_proj,                         # f32 [V, 4*HP]
        "whh_kernel": whh_k.astype(jnp.bfloat16),     # bf16 [HP, 4*HP]
        "wout_kernel": wout_k, "bout_kernel": b_out,
    }


def reference_forward(sentence, params):
    """Pure-JAX f32 reference mirroring torch semantics (correctness check)."""
    emb = params["emb_w"][sentence]                    # [B, T, E]
    W_ih, W_hh = params["W_ih"], params["W_hh"]
    b = params["b_ih"] + params["b_hh"]
    H = W_hh.shape[1]
    B = sentence.shape[0]

    def step(carry, x_t):
        h, c = carry
        gates = x_t @ W_ih.T + h @ W_hh.T + b          # [B, 4H], torch order i,f,g,o
        i = jax.nn.sigmoid(gates[:, 0:H])
        f = jax.nn.sigmoid(gates[:, H:2 * H])
        g = jnp.tanh(gates[:, 2 * H:3 * H])
        o = jax.nn.sigmoid(gates[:, 3 * H:4 * H])
        c = f * c + i * g
        h = o * jnp.tanh(c)
        return (h, c), h

    h0 = jnp.zeros((B, H), jnp.float32)
    c0 = jnp.zeros((B, H), jnp.float32)
    _, hs = lax.scan(step, (h0, c0), jnp.transpose(emb, (1, 0, 2)))   # [T, B, H]
    lstm_out = jnp.transpose(hs, (1, 0, 2))                           # [B, T, H]
    return lstm_out @ params["W_out"].T + params["b_out"]             # [B, T, TAGS]


if __name__ == "__main__":
    VOCAB = 30
    TAGSET = 6
    B, T = 2, 8

    key = jax.random.PRNGKey(0)
    k_params, k_sent = jax.random.split(key)
    params = init_params(k_params, VOCAB, TAGSET, DIM_EMBEDDING, LSTM_HIDDEN)

    sentence = jax.random.randint(k_sent, (B, T), 0, VOCAB, dtype=jnp.int32)

    tag_space = simple_lstm_forward(sentence, params)
    tag_space = jax.block_until_ready(tag_space)

    ref = reference_forward(sentence, params)
    assert tag_space.shape == (B, T, TAGSET), tag_space.shape
    # Tolerance relaxed (bf16 recurrence operands, f32 accumulation/carries).
    max_err = float(jnp.max(jnp.abs(tag_space - ref)))
    assert jnp.allclose(tag_space, ref, atol=5e-2, rtol=5e-2), max_err

    print("KERNEL_OK")
</pallas_src>

<mosaic_0001>
module attributes {stable_mosaic.version = 11 : i64} {
  func.func @lstm_recurrence_kernel(%arg0: memref<8x8x512xf32, #tpu.memory_space<vmem>>, %arg1: memref<128x512xbf16, #tpu.memory_space<vmem>>, %arg2: memref<8x8x128xf32, #tpu.memory_space<vmem>>) attributes {dimension_semantics = [], scalar_prefetch = 0 : i64, scratch_operands = 0 : i64, tpu.core_type = #tpu.core_type<tc>} {
    %cst = arith.constant 0.000000e+00 : f32
    %0 = vector.broadcast %cst : f32 to vector<8x128xf32>
    %cst_0 = arith.constant 0.000000e+00 : f32
    %1 = vector.broadcast %cst_0 : f32 to vector<8x128xf32>
    %c0_i32 = arith.constant 0 : i32
    %2 = arith.index_cast %c0_i32 : i32 to index
    %c0 = arith.constant 0 : index
    %c0_1 = arith.constant 0 : index
    %3 = vector.load %arg0[%2, %c0, %c0_1] : memref<8x8x512xf32, #tpu.memory_space<vmem>>, vector<1x8x512xf32>
    %4 = vector.shape_cast %3 : vector<1x8x512xf32> to vector<8x512xf32>
    %5 = arith.truncf %0 : vector<8x128xf32> to vector<8x128xbf16>
    %c0_2 = arith.constant 0 : index
    %c0_3 = arith.constant 0 : index
    %6 = vector.load %arg1[%c0_2, %c0_3] : memref<128x512xbf16, #tpu.memory_space<vmem>>, vector<128x512xbf16>
    %cst_4 = arith.constant dense<0.000000e+00> : vector<8x512xf32>
    %7 = tpu.matmul %5, %6, %cst_4 {dimension_numbers = #tpu.dot_dimension_numbers<[1], [0], [0], [1], [0, 0, 1, 1], [], []>} : vector<8x128xbf16>, vector<128x512xbf16>, vector<8x512xf32> -> vector<8x512xf32>
    %8 = arith.addf %4, %7 : vector<8x512xf32>
    %9 = vector.extract_strided_slice %8 {offsets = [0, 0], sizes = [8, 384], strides = [1, 1]} : vector<8x512xf32> to vector<8x384xf32>
    %10 = arith.negf %9 : vector<8x384xf32>
    %11 = math.exp %10 : vector<8x384xf32>
    %cst_5 = arith.constant 1.000000e+00 : f32
    %12 = vector.broadcast %cst_5 : f32 to vector<8x384xf32>
    %13 = arith.addf %12, %11 : vector<8x384xf32>
    %14 = arith.divf %12, %13 : vector<8x384xf32>
    %15 = vector.extract_strided_slice %8 {offsets = [0, 384], sizes = [8, 128], strides = [1, 1]} : vector<8x512xf32> to vector<8x128xf32>
    %16 = math.tanh %15 : vector<8x128xf32>
    %17 = vector.extract_strided_slice %14 {offsets = [0, 0], sizes = [8, 128], strides = [1, 1]} : vector<8x384xf32> to vector<8x128xf32>
    %18 = vector.extract_strided_slice %14 {offsets = [0, 128], sizes = [8, 128], strides = [1, 1]} : vector<8x384xf32> to vector<8x128xf32>
    %19 = vector.extract_strided_slice %14 {offsets = [0, 256], sizes = [8, 128], strides = [1, 1]} : vector<8x384xf32> to vector<8x128xf32>
    %20 = arith.mulf %18, %1 : vector<8x128xf32>
    %21 = arith.mulf %17, %16 : vector<8x128xf32>
    %22 = arith.addf %20, %21 : vector<8x128xf32>
    %23 = math.tanh %22 : vector<8x128xf32>
    %24 = arith.mulf %19, %23 : vector<8x128xf32>
    %25 = arith.index_cast %c0_i32 : i32 to index
    %c0_6 = arith.constant 0 : index
    %c0_7 = arith.constant 0 : index
    %26 = vector.load %arg2[%25, %c0_6, %c0_7] : memref<8x8x128xf32, #tpu.memory_space<vmem>>, vector<1x8x128xf32>
    %27 = vector.shape_cast %26 : vector<1x8x128xf32> to vector<8x128xf32>
    %28 = vector.shape_cast %24 : vector<8x128xf32> to vector<1x8x128xf32>
    tpu.vector_store %arg2[%25, %c0_6, %c0_7], %28 {strides = array<i32>} : memref<8x8x128xf32, #tpu.memory_space<vmem>>, vector<1x8x128xf32>,
    %c1_i32 = arith.constant 1 : i32
    %29 = arith.index_cast %c1_i32 : i32 to index
    %c0_8 = arith.constant 0 : index
    %c0_9 = arith.constant 0 : index
    %30 = vector.load %arg0[%29, %c0_8, %c0_9] : memref<8x8x512xf32, #tpu.memory_space<vmem>>, vector<1x8x512xf32>
    %31 = vector.shape_cast %30 : vector<1x8x512xf32> to vector<8x512xf32>
    %32 = arith.truncf %24 : vector<8x128xf32> to vector<8x128xbf16>
    %c0_10 = arith.constant 0 : index
    %c0_11 = arith.constant 0 : index
    %33 = vector.load %arg1[%c0_10, %c0_11] : memref<128x512xbf16, #tpu.memory_space<vmem>>, vector<128x512xbf16>
    %cst_12 = arith.constant dense<0.000000e+00> : vector<8x512xf32>
    %34 = tpu.matmul %32, %33, %cst_12 {dimension_numbers = #tpu.dot_dimension_numbers<[1], [0], [0], [1], [0, 0, 1, 1], [], []>} : vector<8x128xbf16>, vector<128x512xbf16>, vector<8x512xf32> -> vector<8x512xf32>
    %35 = arith.addf %31, %34 : vector<8x512xf32>
    %36 = vector.extract_strided_slice %35 {offsets = [0, 0], sizes = [8, 384], strides = [1, 1]} : vector<8x512xf32> to vector<8x384xf32>
    %37 = arith.negf %36 : vector<8x384xf32>
    %38 = math.exp %37 : vector<8x384xf32>
    %cst_13 = arith.constant 1.000000e+00 : f32
    %39 = vector.broadcast %cst_13 : f32 to vector<8x384xf32>
    %40 = arith.addf %39, %38 : vector<8x384xf32>
    %41 = arith.divf %39, %40 : vector<8x384xf32>
    %42 = vector.extract_strided_slice %35 {offsets = [0, 384], sizes = [8, 128], strides = [1, 1]} : vector<8x512xf32> to vector<8x128xf32>
    %43 = math.tanh %42 : vector<8x128xf32>
    %44 = vector.extract_strided_slice %41 {offsets = [0, 0], sizes = [8, 128], strides = [1, 1]} : vector<8x384xf32> to vector<8x128xf32>
    %45 = vector.extract_strided_slice %41 {offsets = [0, 128], sizes = [8, 128], strides = [1, 1]} : vector<8x384xf32> to vector<8x128xf32>
    %46 = vector.extract_strided_slice %41 {offsets = [0, 256], sizes = [8, 128], strides = [1, 1]} : vector<8x384xf32> to vector<8x128xf32>
    %47 = arith.mulf %45, %22 : vector<8x128xf32>
    %48 = arith.mulf %44, %43 : vector<8x128xf32>
    %49 = arith.addf %47, %48 : vector<8x128xf32>
    %50 = math.tanh %49 : vector<8x128xf32>
    %51 = arith.mulf %46, %50 : vector<8x128xf32>
    %52 = arith.index_cast %c1_i32 : i32 to index
    %c0_14 = arith.constant 0 : index
    %c0_15 = arith.constant 0 : index
    %53 = vector.load %arg2[%52, %c0_14, %c0_15] : memref<8x8x128xf32, #tpu.memory_space<vmem>>, vector<1x8x128xf32>
    %54 = vector.shape_cast %53 : vector<1x8x128xf32> to vector<8x128xf32>
    %55 = vector.shape_cast %51 : vector<8x128xf32> to vector<1x8x128xf32>
    tpu.vector_store %arg2[%52, %c0_14, %c0_15], %55 {strides = array<i32>} : memref<8x8x128xf32, #tpu.memory_space<vmem>>, vector<1x8x128xf32>,
    %c2_i32 = arith.constant 2 : i32
    %56 = arith.index_cast %c2_i32 : i32 to index
    %c0_16 = arith.constant 0 : index
    %c0_17 = arith.constant 0 : index
    %57 = vector.load %arg0[%56, %c0_16, %c0_17] : memref<8x8x512xf32, #tpu.memory_space<vmem>>, vector<1x8x512xf32>
    %58 = vector.shape_cast %57 : vector<1x8x512xf32> to vector<8x512xf32>
    %59 = arith.truncf %51 : vector<8x128xf32> to vector<8x128xbf16>
    %c0_18 = arith.constant 0 : index
    %c0_19 = arith.constant 0 : index
    %60 = vector.load %arg1[%c0_18, %c0_19] : memref<128x512xbf16, #tpu.memory_space<vmem>>, vector<128x512xbf16>
    %cst_20 = arith.constant dense<0.000000e+00> : vector<8x512xf32>
    %61 = tpu.matmul %59, %60, %cst_20 {dimension_numbers = #tpu.dot_dimension_numbers<[1], [0], [0], [1], [0, 0, 1, 1], [], []>} : vector<8x128xbf16>, vector<128x512xbf16>, vector<8x512xf32> -> vector<8x512xf32>
    %62 = arith.addf %58, %61 : vector<8x512xf32>
    %63 = vector.extract_strided_slice %62 {offsets = [0, 0], sizes = [8, 384], strides = [1, 1]} : vector<8x512xf32> to vector<8x384xf32>
    %64 = arith.negf %63 : vector<8x384xf32>
    %65 = math.exp %64 : vector<8x384xf32>
    %cst_21 = arith.constant 1.000000e+00 : f32
    %66 = vector.broadcast %cst_21 : f32 to vector<8x384xf32>
    %67 = arith.addf %66, %65 : vector<8x384xf32>
    %68 = arith.divf %66, %67 : vector<8x384xf32>
    %69 = vector.extract_strided_slice %62 {offsets = [0, 384], sizes = [8, 128], strides = [1, 1]} : vector<8x512xf32> to vector<8x128xf32>
    %70 = math.tanh %69 : vector<8x128xf32>
    %71 = vector.extract_strided_slice %68 {offsets = [0, 0], sizes = [8, 128], strides = [1, 1]} : vector<8x384xf32> to vector<8x128xf32>
    %72 = vector.extract_strided_slice %68 {offsets = [0, 128], sizes = [8, 128], strides = [1, 1]} : vector<8x384xf32> to vector<8x128xf32>
    %73 = vector.extract_strided_slice %68 {offsets = [0, 256], sizes = [8, 128], strides = [1, 1]} : vector<8x384xf32> to vector<8x128xf32>
    %74 = arith.mulf %72, %49 : vector<8x128xf32>
    %75 = arith.mulf %71, %70 : vector<8x128xf32>
    %76 = arith.addf %74, %75 : vector<8x128xf32>
    %77 = math.tanh %76 : vector<8x128xf32>
    %78 = arith.mulf %73, %77 : vector<8x128xf32>
    %79 = arith.index_cast %c2_i32 : i32 to index
    %c0_22 = arith.constant 0 : index
    %c0_23 = arith.constant 0 : index
    %80 = vector.load %arg2[%79, %c0_22, %c0_23] : memref<8x8x128xf32, #tpu.memory_space<vmem>>, vector<1x8x128xf32>
    %81 = vector.shape_cast %80 : vector<1x8x128xf32> to vector<8x128xf32>
    %82 = vector.shape_cast %78 : vector<8x128xf32> to vector<1x8x128xf32>
    tpu.vector_store %arg2[%79, %c0_22, %c0_23], %82 {strides = array<i32>} : memref<8x8x128xf32, #tpu.memory_space<vmem>>, vector<1x8x128xf32>,
    %c3_i32 = arith.constant 3 : i32
    %83 = arith.index_cast %c3_i32 : i32 to index
    %c0_24 = arith.constant 0 : index
    %c0_25 = arith.constant 0 : index
    %84 = vector.load %arg0[%83, %c0_24, %c0_25] : memref<8x8x512xf32, #tpu.memory_space<vmem>>, vector<1x8x512xf32>
    %85 = vector.shape_cast %84 : vector<1x8x512xf32> to vector<8x512xf32>
    %86 = arith.truncf %78 : vector<8x128xf32> to vector<8x128xbf16>
    %c0_26 = arith.constant 0 : index
    %c0_27 = arith.constant 0 : index
    %87 = vector.load %arg1[%c0_26, %c0_27] : memref<128x512xbf16, #tpu.memory_space<vmem>>, vector<128x512xbf16>
    %cst_28 = arith.constant dense<0.000000e+00> : vector<8x512xf32>
    %88 = tpu.matmul %86, %87, %cst_28 {dimension_numbers = #tpu.dot_dimension_numbers<[1], [0], [0], [1], [0, 0, 1, 1], [], []>} : vector<8x128xbf16>, vector<128x512xbf16>, vector<8x512xf32> -> vector<8x512xf32>
    %89 = arith.addf %85, %88 : vector<8x512xf32>
    %90 = vector.extract_strided_slice %89 {offsets = [0, 0], sizes = [8, 384], strides = [1, 1]} : vector<8x512xf32> to vector<8x384xf32>
    %91 = arith.negf %90 : vector<8x384xf32>
    %92 = math.exp %91 : vector<8x384xf32>
    %cst_29 = arith.constant 1.000000e+00 : f32
    %93 = vector.broadcast %cst_29 : f32 to vector<8x384xf32>
    %94 = arith.addf %93, %92 : vector<8x384xf32>
    %95 = arith.divf %93, %94 : vector<8x384xf32>
    %96 = vector.extract_strided_slice %89 {offsets = [0, 384], sizes = [8, 128], strides = [1, 1]} : vector<8x512xf32> to vector<8x128xf32>
    %97 = math.tanh %96 : vector<8x128xf32>
    %98 = vector.extract_strided_slice %95 {offsets = [0, 0], sizes = [8, 128], strides = [1, 1]} : vector<8x384xf32> to vector<8x128xf32>
    %99 = vector.extract_strided_slice %95 {offsets = [0, 128], sizes = [8, 128], strides = [1, 1]} : vector<8x384xf32> to vector<8x128xf32>
    %100 = vector.extract_strided_slice %95 {offsets = [0, 256], sizes = [8, 128], strides = [1, 1]} : vector<8x384xf32> to vector<8x128xf32>
    %101 = arith.mulf %99, %76 : vector<8x128xf32>
    %102 = arith.mulf %98, %97 : vector<8x128xf32>
    %103 = arith.addf %101, %102 : vector<8x128xf32>
    %104 = math.tanh %103 : vector<8x128xf32>
    %105 = arith.mulf %100, %104 : vector<8x128xf32>
    %106 = arith.index_cast %c3_i32 : i32 to index
    %c0_30 = arith.constant 0 : index
    %c0_31 = arith.constant 0 : index
    %107 = vector.load %arg2[%106, %c0_30, %c0_31] : memref<8x8x128xf32, #tpu.memory_space<vmem>>, vector<1x8x128xf32>
    %108 = vector.shape_cast %107 : vector<1x8x128xf32> to vector<8x128xf32>
    %109 = vector.shape_cast %105 : vector<8x128xf32> to vector<1x8x128xf32>
    tpu.vector_store %arg2[%106, %c0_30, %c0_31], %109 {strides = array<i32>} : memref<8x8x128xf32, #tpu.memory_space<vmem>>, vector<1x8x128xf32>,
    %c4_i32 = arith.constant 4 : i32
    %110 = arith.index_cast %c4_i32 : i32 to index
    %c0_32 = arith.constant 0 : index
    %c0_33 = arith.constant 0 : index
    %111 = vector.load %arg0[%110, %c0_32, %c0_33] : memref<8x8x512xf32, #tpu.memory_space<vmem>>, vector<1x8x512xf32>
    %112 = vector.shape_cast %111 : vector<1x8x512xf32> to vector<8x512xf32>
    %113 = arith.truncf %105 : vector<8x128xf32> to vector<8x128xbf16>
    %c0_34 = arith.constant 0 : index
    %c0_35 = arith.constant 0 : index
    %114 = vector.load %arg1[%c0_34, %c0_35] : memref<128x512xbf16, #tpu.memory_space<vmem>>, vector<128x512xbf16>
    %cst_36 = arith.constant dense<0.000000e+00> : vector<8x512xf32>
    %115 = tpu.matmul %113, %114, %cst_36 {dimension_numbers = #tpu.dot_dimension_numbers<[1], [0], [0], [1], [0, 0, 1, 1], [], []>} : vector<8x128xbf16>, vector<128x512xbf16>, vector<8x512xf32> -> vector<8x512xf32>
    %116 = arith.addf %112, %115 : vector<8x512xf32>
    %117 = vector.extract_strided_slice %116 {offsets = [0, 0], sizes = [8, 384], strides = [1, 1]} : vector<8x512xf32> to vector<8x384xf32>
    %118 = arith.negf %117 : vector<8x384xf32>
    %119 = math.exp %118 : vector<8x384xf32>
    %cst_37 = arith.constant 1.000000e+00 : f32
    %120 = vector.broadcast %cst_37 : f32 to vector<8x384xf32>
    %121 = arith.addf %120, %119 : vector<8x384xf32>
    %122 = arith.divf %120, %121 : vector<8x384xf32>
    %123 = vector.extract_strided_slice %116 {offsets = [0, 384], sizes = [8, 128], strides = [1, 1]} : vector<8x512xf32> to vector<8x128xf32>
    %124 = math.tanh %123 : vector<8x128xf32>
    %125 = vector.extract_strided_slice %122 {offsets = [0, 0], sizes = [8, 128], strides = [1, 1]} : vector<8x384xf32> to vector<8x128xf32>
    %126 = vector.extract_strided_slice %122 {offsets = [0, 128], sizes = [8, 128], strides = [1, 1]} : vector<8x384xf32> to vector<8x128xf32>
    %127 = vector.extract_strided_slice %122 {offsets = [0, 256], sizes = [8, 128], strides = [1, 1]} : vector<8x384xf32> to vector<8x128xf32>
    %128 = arith.mulf %126, %103 : vector<8x128xf32>
    %129 = arith.mulf %125, %124 : vector<8x128xf32>
    %130 = arith.addf %128, %129 : vector<8x128xf32>
    %131 = math.tanh %130 : vector<8x128xf32>
    %132 = arith.mulf %127, %131 : vector<8x128xf32>
    %133 = arith.index_cast %c4_i32 : i32 to index
    %c0_38 = arith.constant 0 : index
    %c0_39 = arith.constant 0 : index
    %134 = vector.load %arg2[%133, %c0_38, %c0_39] : memref<8x8x128xf32, #tpu.memory_space<vmem>>, vector<1x8x128xf32>
    %135 = vector.shape_cast %134 : vector<1x8x128xf32> to vector<8x128xf32>
    %136 = vector.shape_cast %132 : vector<8x128xf32> to vector<1x8x128xf32>
    tpu.vector_store %arg2[%133, %c0_38, %c0_39], %136 {strides = array<i32>} : memref<8x8x128xf32, #tpu.memory_space<vmem>>, vector<1x8x128xf32>,
    %c5_i32 = arith.constant 5 : i32
    %137 = arith.index_cast %c5_i32 : i32 to index
    %c0_40 = arith.constant 0 : index
    %c0_41 = arith.constant 0 : index
    %138 = vector.load %arg0[%137, %c0_40, %c0_41] : memref<8x8x512xf32, #tpu.memory_space<vmem>>, vector<1x8x512xf32>
    %139 = vector.shape_cast %138 : vector<1x8x512xf32> to vector<8x512xf32>
    %140 = arith.truncf %132 : vector<8x128xf32> to vector<8x128xbf16>
    %c0_42 = arith.constant 0 : index
    %c0_43 = arith.constant 0 : index
    %141 = vector.load %arg1[%c0_42, %c0_43] : memref<128x512xbf16, #tpu.memory_space<vmem>>, vector<128x512xbf16>
    %cst_44 = arith.constant dense<0.000000e+00> : vector<8x512xf32>
    %142 = tpu.matmul %140, %141, %cst_44 {dimension_numbers = #tpu.dot_dimension_numbers<[1], [0], [0], [1], [0, 0, 1, 1], [], []>} : vector<8x128xbf16>, vector<128x512xbf16>, vector<8x512xf32> -> vector<8x512xf32>
    %143 = arith.addf %139, %142 : vector<8x512xf32>
    %144 = vector.extract_strided_slice %143 {offsets = [0, 0], sizes = [8, 384], strides = [1, 1]} : vector<8x512xf32> to vector<8x384xf32>
    %145 = arith.negf %144 : vector<8x384xf32>
    %146 = math.exp %145 : vector<8x384xf32>
    %cst_45 = arith.constant 1.000000e+00 : f32
    %147 = vector.broadcast %cst_45 : f32 to vector<8x384xf32>
    %148 = arith.addf %147, %146 : vector<8x384xf32>
    %149 = arith.divf %147, %148 : vector<8x384xf32>
    %150 = vector.extract_strided_slice %143 {offsets = [0, 384], sizes = [8, 128], strides = [1, 1]} : vector<8x512xf32> to vector<8x128xf32>
    %151 = math.tanh %150 : vector<8x128xf32>
    %152 = vector.extract_strided_slice %149 {offsets = [0, 0], sizes = [8, 128], strides = [1, 1]} : vector<8x384xf32> to vector<8x128xf32>
    %153 = vector.extract_strided_slice %149 {offsets = [0, 128], sizes = [8, 128], strides = [1, 1]} : vector<8x384xf32> to vector<8x128xf32>
    %154 = vector.extract_strided_slice %149 {offsets = [0, 256], sizes = [8, 128], strides = [1, 1]} : vector<8x384xf32> to vector<8x128xf32>
    %155 = arith.mulf %153, %130 : vector<8x128xf32>
    %156 = arith.mulf %152, %151 : vector<8x128xf32>
    %157 = arith.addf %155, %156 : vector<8x128xf32>
    %158 = math.tanh %157 : vector<8x128xf32>
    %159 = arith.mulf %154, %158 : vector<8x128xf32>
    %160 = arith.index_cast %c5_i32 : i32 to index
    %c0_46 = arith.constant 0 : index
    %c0_47 = arith.constant 0 : index
    %161 = vector.load %arg2[%160, %c0_46, %c0_47] : memref<8x8x128xf32, #tpu.memory_space<vmem>>, vector<1x8x128xf32>
    %162 = vector.shape_cast %161 : vector<1x8x128xf32> to vector<8x128xf32>
    %163 = vector.shape_cast %159 : vector<8x128xf32> to vector<1x8x128xf32>
    tpu.vector_store %arg2[%160, %c0_46, %c0_47], %163 {strides = array<i32>} : memref<8x8x128xf32, #tpu.memory_space<vmem>>, vector<1x8x128xf32>,
    %c6_i32 = arith.constant 6 : i32
    %164 = arith.index_cast %c6_i32 : i32 to index
    %c0_48 = arith.constant 0 : index
    %c0_49 = arith.constant 0 : index
    %165 = vector.load %arg0[%164, %c0_48, %c0_49] : memref<8x8x512xf32, #tpu.memory_space<vmem>>, vector<1x8x512xf32>
    %166 = vector.shape_cast %165 : vector<1x8x512xf32> to vector<8x512xf32>
    %167 = arith.truncf %159 : vector<8x128xf32> to vector<8x128xbf16>
    %c0_50 = arith.constant 0 : index
    %c0_51 = arith.constant 0 : index
    %168 = vector.load %arg1[%c0_50, %c0_51] : memref<128x512xbf16, #tpu.memory_space<vmem>>, vector<128x512xbf16>
    %cst_52 = arith.constant dense<0.000000e+00> : vector<8x512xf32>
    %169 = tpu.matmul %167, %168, %cst_52 {dimension_numbers = #tpu.dot_dimension_numbers<[1], [0], [0], [1], [0, 0, 1, 1], [], []>} : vector<8x128xbf16>, vector<128x512xbf16>, vector<8x512xf32> -> vector<8x512xf32>
    %170 = arith.addf %166, %169 : vector<8x512xf32>
    %171 = vector.extract_strided_slice %170 {offsets = [0, 0], sizes = [8, 384], strides = [1, 1]} : vector<8x512xf32> to vector<8x384xf32>
    %172 = arith.negf %171 : vector<8x384xf32>
    %173 = math.exp %172 : vector<8x384xf32>
    %cst_53 = arith.constant 1.000000e+00 : f32
    %174 = vector.broadcast %cst_53 : f32 to vector<8x384xf32>
    %175 = arith.addf %174, %173 : vector<8x384xf32>
    %176 = arith.divf %174, %175 : vector<8x384xf32>
    %177 = vector.extract_strided_slice %170 {offsets = [0, 384], sizes = [8, 128], strides = [1, 1]} : vector<8x512xf32> to vector<8x128xf32>
    %178 = math.tanh %177 : vector<8x128xf32>
    %179 = vector.extract_strided_slice %176 {offsets = [0, 0], sizes = [8, 128], strides = [1, 1]} : vector<8x384xf32> to vector<8x128xf32>
    %180 = vector.extract_strided_slice %176 {offsets = [0, 128], sizes = [8, 128], strides = [1, 1]} : vector<8x384xf32> to vector<8x128xf32>
    %181 = vector.extract_strided_slice %176 {offsets = [0, 256], sizes = [8, 128], strides = [1, 1]} : vector<8x384xf32> to vector<8x128xf32>
    %182 = arith.mulf %180, %157 : vector<8x128xf32>
    %183 = arith.mulf %179, %178 : vector<8x128xf32>
    %184 = arith.addf %182, %183 : vector<8x128xf32>
    %185 = math.tanh %184 : vector<8x128xf32>
    %186 = arith.mulf %181, %185 : vector<8x128xf32>
    %187 = arith.index_cast %c6_i32 : i32 to index
    %c0_54 = arith.constant 0 : index
    %c0_55 = arith.constant 0 : index
    %188 = vector.load %arg2[%187, %c0_54, %c0_55] : memref<8x8x128xf32, #tpu.memory_space<vmem>>, vector<1x8x128xf32>
    %189 = vector.shape_cast %188 : vector<1x8x128xf32> to vector<8x128xf32>
    %190 = vector.shape_cast %186 : vector<8x128xf32> to vector<1x8x128xf32>
    tpu.vector_store %arg2[%187, %c0_54, %c0_55], %190 {strides = array<i32>} : memref<8x8x128xf32, #tpu.memory_space<vmem>>, vector<1x8x128xf32>,
    %c7_i32 = arith.constant 7 : i32
    %191 = arith.index_cast %c7_i32 : i32 to index
    %c0_56 = arith.constant 0 : index
    %c0_57 = arith.constant 0 : index
    %192 = vector.load %arg0[%191, %c0_56, %c0_57] : memref<8x8x512xf32, #tpu.memory_space<vmem>>, vector<1x8x512xf32>
    %193 = vector.shape_cast %192 : vector<1x8x512xf32> to vector<8x512xf32>
    %194 = arith.truncf %186 : vector<8x128xf32> to vector<8x128xbf16>
    %c0_58 = arith.constant 0 : index
    %c0_59 = arith.constant 0 : index
    %195 = vector.load %arg1[%c0_58, %c0_59] : memref<128x512xbf16, #tpu.memory_space<vmem>>, vector<128x512xbf16>
    %cst_60 = arith.constant dense<0.000000e+00> : vector<8x512xf32>
    %196 = tpu.matmul %194, %195, %cst_60 {dimension_numbers = #tpu.dot_dimension_numbers<[1], [0], [0], [1], [0, 0, 1, 1], [], []>} : vector<8x128xbf16>, vector<128x512xbf16>, vector<8x512xf32> -> vector<8x512xf32>
    %197 = arith.addf %193, %196 : vector<8x512xf32>
    %198 = vector.extract_strided_slice %197 {offsets = [0, 0], sizes = [8, 384], strides = [1, 1]} : vector<8x512xf32> to vector<8x384xf32>
    %199 = arith.negf %198 : vector<8x384xf32>
    %200 = math.exp %199 : vector<8x384xf32>
    %cst_61 = arith.constant 1.000000e+00 : f32
    %201 = vector.broadcast %cst_61 : f32 to vector<8x384xf32>
    %202 = arith.addf %201, %200 : vector<8x384xf32>
    %203 = arith.divf %201, %202 : vector<8x384xf32>
    %204 = vector.extract_strided_slice %197 {offsets = [0, 384], sizes = [8, 128], strides = [1, 1]} : vector<8x512xf32> to vector<8x128xf32>
    %205 = math.tanh %204 : vector<8x128xf32>
    %206 = vector.extract_strided_slice %203 {offsets = [0, 0], sizes = [8, 128], strides = [1, 1]} : vector<8x384xf32> to vector<8x128xf32>
    %207 = vector.extract_strided_slice %203 {offsets = [0, 128], sizes = [8, 128], strides = [1, 1]} : vector<8x384xf32> to vector<8x128xf32>
    %208 = vector.extract_strided_slice %203 {offsets = [0, 256], sizes = [8, 128], strides = [1, 1]} : vector<8x384xf32> to vector<8x128xf32>
    %209 = arith.mulf %207, %184 : vector<8x128xf32>
    %210 = arith.mulf %206, %205 : vector<8x128xf32>
    %211 = arith.addf %209, %210 : vector<8x128xf32>
    %212 = math.tanh %211 : vector<8x128xf32>
    %213 = arith.mulf %208, %212 : vector<8x128xf32>
    %214 = arith.index_cast %c7_i32 : i32 to index
    %c0_62 = arith.constant 0 : index
    %c0_63 = arith.constant 0 : index
    %215 = vector.load %arg2[%214, %c0_62, %c0_63] : memref<8x8x128xf32, #tpu.memory_space<vmem>>, vector<1x8x128xf32>
    %216 = vector.shape_cast %215 : vector<1x8x128xf32> to vector<8x128xf32>
    %217 = vector.shape_cast %213 : vector<8x128xf32> to vector<1x8x128xf32>
    tpu.vector_store %arg2[%214, %c0_62, %c0_63], %217 {strides = array<i32>} : memref<8x8x128xf32, #tpu.memory_space<vmem>>, vector<1x8x128xf32>,
    %c8_i32 = arith.constant 8 : i32
    return
  }
}

</mosaic_0001>

<bundles_post_ra>
// kernel: simple_lstm_forward.1
= control target key start
LH: loop header
LB: loop body
LE: loop exit
PB: predicated region body
PF: predicated region fallthrough
CT: control target
= control target key end

     0   :  { %v3033_v1 = vmov 0   ;;  %s3787_s1 = inlined_call_operand.vmem [shape: bf16[128,512], index: 1, kind: input, shape index: {}]   ;;  %s3788_s0 = inlined_call_operand.vmem [shape: f32[8,8,512], index: 0, kind: input, shape index: {}]   ;;  %s3789_s2 = inlined_call_operand.vmem [shape: f32[8,8,128], index: 2, kind: output, shape index: {}]  }
   0x1   :  { %v3052_v0 = vld [vmem:[%s3787_s1 + $0x4] ss:$16 sps:$4 sm:$0xff]   ;;  %240 = vmatprep.mubr.bf16.mxu0 %v3033_v1  ;;  %281 = vmatprep.mubr.bf16.mxu1 %v3033_v1  ;;  %v3059_v2 = vld [vmem:[%s3787_s1] ss:$16 sps:$4 sm:$0xff]   ;;  %v3082_v6 = vld [vmem:[%s3787_s1 + $0xc] ss:$16 sps:$4 sm:$0xff]  }
   0x2   :  { %208 = vmatprep.subr.bf16.mxu0 %v3052_v0  ;;  %v3065_v3 = vld [vmem:[%s3787_s1 + $0x24] ss:$16 sps:$4 sm:$0xff]   ;;  %v3071_v4 = vld [vmem:[%s3787_s1 + $0x20] ss:$16 sps:$4 sm:$0xff]   ;;  %v3087_v7 = vld [vmem:[%s3787_s1 + $0x8] ss:$16 sps:$4 sm:$0xff]   ;;  %249 = vmatprep.subr.bf16.mxu1 %v3082_v6 }
   0x3   :  { %209 = vmatpush1.bf16.msra.mxu0 %v3059_v2  ;;  %v3077_v5 = vld [vmem:[%s3787_s1 + $0x44] ss:$16 sps:$4 sm:$0xff]   ;;  %v3093_v8 = vld [vmem:[%s3787_s1 + $0x40] ss:$16 sps:$4 sm:$0xff]   ;;  %250 = vmatpush1.bf16.msra.mxu1 %v3087_v7  ;;  %v3106_v10 = vld [vmem:[%s3787_s1 + $0x2c] ss:$16 sps:$4 sm:$0xff]  }
   0x4   :  { %210 = vmatprep.subr.bf16.mxu0 %v3065_v3  ;;  %v3100_v9 = vld [vmem:[%s3787_s1 + $0x64] ss:$16 sps:$4 sm:$0xff]   ;;  %v3111_v11 = vld [vmem:[%s3787_s1 + $0x28] ss:$16 sps:$4 sm:$0xff]   ;;  %251 = vmatprep.subr.bf16.mxu1 %v3106_v10  ;;  %v3118_v12 = vld [vmem:[%s3787_s1 + $0x60] ss:$16 sps:$4 sm:$0xff]  }
   0x5   :  { %v3123_v13 = vld [vmem:[%s3787_s1 + $0x84] ss:$16 sps:$4 sm:$0xff]   ;;  %v3128_v14 = vld [vmem:[%s3787_s1 + $0x4c] ss:$16 sps:$4 sm:$0xff]   ;;  %v3135_v15 = vld [vmem:[%s3787_s1 + $0x48] ss:$16 sps:$4 sm:$0xff]  }
   0x6   :  { %v3141_v16 = vld [vmem:[%s3787_s1 + $0x6c] ss:$16 sps:$4 sm:$0xff]   ;;  %v3147_v17 = vld [vmem:[%s3787_s1 + $0x80] ss:$16 sps:$4 sm:$0xff]   ;;  %v3153_v18 = vld [vmem:[%s3787_s1 + $0xa4] ss:$16 sps:$4 sm:$0xff]  }
   0x7   :  { %211 = vmatpush1.bf16.msra.mxu0 %v3071_v4  ;;  %252 = vmatpush1.bf16.msra.mxu1 %v3111_v11  ;;  %v3159_v19 = vld [vmem:[%s3787_s1 + $0x68] ss:$16 sps:$4 sm:$0xff]   ;;  %v3165_v20 = vld [vmem:[%s3787_s1 + $0x8c] ss:$16 sps:$4 sm:$0xff]   ;;  %v3171_v21 = vld [vmem:[%s3787_s1 + $0xa0] ss:$16 sps:$4 sm:$0xff]  }
   0x8   :  { %212 = vmatprep.subr.bf16.mxu0 %v3077_v5  ;;  %253 = vmatprep.subr.bf16.mxu1 %v3128_v14  ;;  %v3176_v22 = vld [vmem:[%s3787_s1 + $0xc4] ss:$16 sps:$4 sm:$0xff]   ;;  %v3183_v23 = vld [vmem:[%s3787_s1 + $0x88] ss:$16 sps:$4 sm:$0xff]   ;;  %v3188_v24 = vld [vmem:[%s3787_s1 + $0xc0] ss:$16 sps:$4 sm:$0xff]  }
   0x9   :  { %v3194_v25 = vld [vmem:[%s3787_s1 + $0xac] ss:$16 sps:$4 sm:$0xff]   ;;  %v3199_v26 = vld [vmem:[%s3787_s1 + $0xe4] ss:$16 sps:$4 sm:$0xff]   ;;  %v3204_v27 = vld [vmem:[%s3787_s1 + $0xa8] ss:$16 sps:$4 sm:$0xff]  }
   0xa   :  { %v3210_v28 = vld [vmem:[%s3787_s1 + $0xcc] ss:$16 sps:$4 sm:$0xff]   ;;  %v3217_v29 = vld [vmem:[%s3787_s1 + $0xe0] ss:$16 sps:$4 sm:$0xff]   ;;  %v3223_v30 = vld [vmem:[%s3787_s1 + $0xc8] ss:$16 sps:$4 sm:$0xff]  }
   0xb   :  { %213 = vmatpush1.bf16.msra.mxu0 %v3093_v8  ;;  %254 = vmatpush1.bf16.msra.mxu1 %v3135_v15  ;;  %v3229_v31 = vld [vmem:[%s3787_s1 + $0xec] ss:$16 sps:$4 sm:$0xff]   ;;  %v3239_v32 = vld [vmem:[%s3787_s1 + $0xe8] ss:$16 sps:$4 sm:$0xff]   ;;  %v12_v33 = vld [vmem:[%s3788_s0] sm:$0xff] }
   0xc   :  { %214 = vmatprep.subr.bf16.mxu0 %v3100_v9  ;;  %255 = vmatprep.subr.bf16.mxu1 %v3141_v16  ;;  %v13_v34 = vld [vmem:[%s3788_s0 + $0x8] sm:$0xff]  ;;  %v14_v43 = vld [vmem:[%s3788_s0 + $0x10] sm:$0xff]  ;;  %v15_v49 = vld [vmem:[%s3788_s0 + $0x18] sm:$0xff] }
   0xf   :  { %215 = vmatpush1.bf16.msra.mxu0 %v3118_v12  ;;  %256 = vmatpush1.bf16.msra.mxu1 %v3159_v19 }
  0x10   :  { %216 = vmatprep.subr.bf16.mxu0 %v3123_v13  ;;  %257 = vmatprep.subr.bf16.mxu1 %v3165_v20 }
  0x13   :  { %217 = vmatpush1.bf16.msra.mxu0 %v3147_v17  ;;  %258 = vmatpush1.bf16.msra.mxu1 %v3183_v23 }
  0x14   :  { %218 = vmatprep.subr.bf16.mxu0 %v3153_v18  ;;  %259 = vmatprep.subr.bf16.mxu1 %v3194_v25 }
  0x17   :  { %219 = vmatpush1.bf16.msra.mxu0 %v3171_v21  ;;  %260 = vmatpush1.bf16.msra.mxu1 %v3204_v27 }
  0x18   :  { %220 = vmatprep.subr.bf16.mxu0 %v3176_v22  ;;  %261 = vmatprep.subr.bf16.mxu1 %v3210_v28 }
  0x1b   :  { %221 = vmatpush1.bf16.msra.mxu0 %v3188_v24  ;;  %262 = vmatpush1.bf16.msra.mxu1 %v3223_v30 }
  0x1c   :  { %222 = vmatprep.subr.bf16.mxu0 %v3199_v26  ;;  %263 = vmatprep.subr.bf16.mxu1 %v3229_v31 }
  0x1f   :  { %223 = vmatpush1.bf16.msra.mxu0 %v3217_v29  ;;  %264 = vmatpush1.bf16.msra.mxu1 %v3239_v32 }
  0x20   :  { %517 = vmatprep.subr.bf16.mxu0 %v3052_v0  ;;  %558 = vmatprep.subr.bf16.mxu1 %v3082_v6 }
  0x22   :  { %241 = vmatmul.mubr.bf16.vlgmr.msra.gmra.mrb[0].mxu0 %v3033_v1  ;;  %282 = vmatmul.mubr.bf16.vlgmr.msra.gmra.mrb[0].mxu1 %v3033_v1 }
  0x23   :  { %518 = vmatpush1.bf16.msra.mxu0 %v3059_v2  ;;  %549 = vmatprep.mubr.bf16.mxu0 %v3033_v1 }
  0x24   :  { %519 = vmatprep.subr.bf16.mxu0 %v3065_v3  ;;  %559 = vmatpush1.bf16.msra.mxu1 %v3087_v7 }
  0x25   :  { %560 = vmatprep.subr.bf16.mxu1 %v3106_v10  ;;  %590 = vmatprep.mubr.bf16.mxu1 %v3033_v1 }
  0x27   :  { %520 = vmatpush1.bf16.msra.mxu0 %v3071_v4 }
  0x28   :  { %521 = vmatprep.subr.bf16.mxu0 %v3077_v5  ;;  %561 = vmatpush1.bf16.msra.mxu1 %v3111_v11 }
  0x29   :  { %562 = vmatprep.subr.bf16.mxu1 %v3128_v14 }
  0x2b   :  { %522 = vmatpush1.bf16.msra.mxu0 %v3093_v8 }
  0x2c   :  { %523 = vmatprep.subr.bf16.mxu0 %v3100_v9  ;;  %563 = vmatpush1.bf16.msra.mxu1 %v3135_v15 }
  0x2d   :  { %564 = vmatprep.subr.bf16.mxu1 %v3141_v16 }
  0x2f   :  { %524 = vmatpush1.bf16.msra.mxu0 %v3118_v12 }
  0x30   :  { %525 = vmatprep.subr.bf16.mxu0 %v3123_v13  ;;  %565 = vmatpush1.bf16.msra.mxu1 %v3159_v19 }
  0x31   :  { %566 = vmatprep.subr.bf16.mxu1 %v3165_v20 }
  0x33   :  { %526 = vmatpush1.bf16.msra.mxu0 %v3147_v17 }
  0x34   :  { %527 = vmatprep.subr.bf16.mxu0 %v3153_v18  ;;  %567 = vmatpush1.bf16.msra.mxu1 %v3183_v23 }
  0x35   :  { %568 = vmatprep.subr.bf16.mxu1 %v3194_v25 }
  0x37   :  { %528 = vmatpush1.bf16.msra.mxu0 %v3171_v21 }
  0x38   :  { %529 = vmatprep.subr.bf16.mxu0 %v3176_v22  ;;  %569 = vmatpush1.bf16.msra.mxu1 %v3204_v27 }
  0x39   :  { %570 = vmatprep.subr.bf16.mxu1 %v3210_v28 }
  0x3b   :  { %530 = vmatpush1.bf16.msra.mxu0 %v3188_v24 }
  0x3c   :  { %531 = vmatprep.subr.bf16.mxu0 %v3199_v26  ;;  %571 = vmatpush1.bf16.msra.mxu1 %v3223_v30 }
  0x3d   :  { %572 = vmatprep.subr.bf16.mxu1 %v3229_v31 }
  0x3f   :  { %532 = vmatpush1.bf16.msra.mxu0 %v3217_v29 }
  0x40   :  { %827 = vmatprep.subr.bf16.mxu0 %v3052_v0  ;;  %573 = vmatpush1.bf16.msra.mxu1 %v3239_v32 }
  0x41   :  { %868 = vmatprep.subr.bf16.mxu1 %v3082_v6 }
  0xf5   :  { %v242_v35 = vpop.f32.mrb[0].mxu0  ;;  %v283_v44 = vpop.f32.mrb[0].mxu1 }
  0xf6   :  { %v290_v36 = vadd.f32 %v242_v35, %v12_v33  ;;  %v244_v37 = vpop.f32.mrb[1].mxu0  ;;  %v285_v45 = vpop.f32.mrb[1].mxu1  ;;  %v292_v46 = vadd.f32 %v283_v44, %v14_v43 }
  0xf7   :  { %v291_v38 = vadd.f32 %v244_v37, %v13_v34  ;;  %v246_v39 = vpop.f32.mrb[2].mxu0  ;;  %v287_v47 = vpop.f32.mrb[2].mxu1  ;;  %v293_v51 = vadd.f32 %v285_v45, %v15_v49  ;;  %v2528_v37 = vld [vmem:[%s3788_s0 + $0x20] sm:$0xff]  ;;  %v2530_v49 = vld [vmem:[%s3788_s0 + $0x30] sm:$0xff] }
  0xf8   :  { %v2525_v40 = vmul.f32 -1.442695, %v290_v36  ;;  %v247_v41 = vpop.f32.mrb[3].mxu0  ;;  %v288_v48 = vpop.f32.mrb[3].mxu1  ;;  %v2527_v50 = vmul.f32 -1.442695, %v292_v46 }
  0xf9   :  { %v2526_v42 = vmul.f32 -1.442695, %v291_v38  ;;  %v2529_v38 = vld [vmem:[%s3788_s0 + $0x28] sm:$0xff] }
  0xfa   :  { %2905 = vpow2.f32 %v2525_v40 }
  0xfb   :  { %2907 = vpow2.f32 %v2526_v42 }
  0xfc   :  { %2909 = vpow2.f32 %v2527_v50 }
  0xfd   :  { %2911 = vtanh.f32 %v293_v51  ;;  %v2531_v51 = vld [vmem:[%s3788_s0 + $0x38] sm:$0xff] }
 0x104   :  { %v2906_v52 = vpop.eup %2905 }
 0x105   :  { %v2908_v53 = vpop.eup %2907  ;;  %v303_v54 = vadd.f32 1.0, %v2906_v52 }
 0x106   :  { %v304_v55 = vadd.f32 1.0, %v2908_v53  ;;  %v2910_v56 = vpop.eup %2909 }
 0x107   :  { %2913 = vrcp.f32 %v303_v54  ;;  %v2912_v57 = vpop.eup %2911  ;;  %v305_v59 = vadd.f32 1.0, %v2910_v56 }
 0x108   :  { %2915 = vrcp.f32 %v304_v55 }
 0x109   :  { %2917 = vrcp.f32 %v305_v59 }
 0x111   :  { %v2914_v58 = vpop.eup %2913 }
 0x112   :  { %v2916_v60 = vpop.eup %2915  ;;  %v314_v61 = vmul.f32 %v2914_v58, %v2912_v57 }
 0x113   :  { %v313_v62 = vmul.f32 0.0, %v2916_v60  ;;  %v2918_v33 = vpop.eup %2917 }
 0x115   :  { %v3293_v63 = vadd.f32 %v314_v61, %v313_v62 }
 0x117   :  { %2919 = vtanh.f32 %v3293_v63 }
 0x121   :  { %v2920_v34 = vpop.eup %2919 }
 0x122   :  { %v317_v35 = vmul.f32 %v2920_v34, %v2918_v33 }
 0x124   :  { %318 = vst [vmem:[%s3789_s2] sm:$0xff] %v317_v35  ;;  %v324_v36 = vpack.c.bf16 %v317_v35, %v317_v35 }
 0x126   :  { %550 = vmatmul.mubr.bf16.vlgmr.msra.gmra.mrb[4].mxu0 %v324_v36  ;;  %591 = vmatmul.mubr.bf16.vlgmr.msra.gmra.mrb[4].mxu1 %v324_v36 }
 0x127   :  { %828 = vmatpush1.bf16.msra.mxu0 %v3059_v2  ;;  %869 = vmatpush1.bf16.msra.mxu1 %v3087_v7 }
 0x128   :  { %829 = vmatprep.subr.bf16.mxu0 %v3065_v3  ;;  %870 = vmatprep.subr.bf16.mxu1 %v3106_v10 }
 0x129   :  { %859 = vmatprep.mubr.bf16.mxu0 %v3033_v1  ;;  %900 = vmatprep.mubr.bf16.mxu1 %v3033_v1 }
 0x12b   :  { %830 = vmatpush1.bf16.msra.mxu0 %v3071_v4  ;;  %871 = vmatpush1.bf16.msra.mxu1 %v3111_v11 }
 0x12c   :  { %831 = vmatprep.subr.bf16.mxu0 %v3077_v5  ;;  %872 = vmatprep.subr.bf16.mxu1 %v3128_v14 }
 0x12f   :  { %832 = vmatpush1.bf16.msra.mxu0 %v3093_v8  ;;  %873 = vmatpush1.bf16.msra.mxu1 %v3135_v15 }
 0x130   :  { %833 = vmatprep.subr.bf16.mxu0 %v3100_v9  ;;  %874 = vmatprep.subr.bf16.mxu1 %v3141_v16 }
 0x133   :  { %834 = vmatpush1.bf16.msra.mxu0 %v3118_v12  ;;  %875 = vmatpush1.bf16.msra.mxu1 %v3159_v19 }
 0x134   :  { %835 = vmatprep.subr.bf16.mxu0 %v3123_v13  ;;  %876 = vmatprep.subr.bf16.mxu1 %v3165_v20 }
 0x137   :  { %836 = vmatpush1.bf16.msra.mxu0 %v3147_v17  ;;  %877 = vmatpush1.bf16.msra.mxu1 %v3183_v23 }
 0x138   :  { %837 = vmatprep.subr.bf16.mxu0 %v3153_v18  ;;  %878 = vmatprep.subr.bf16.mxu1 %v3194_v25 }
 0x13b   :  { %838 = vmatpush1.bf16.msra.mxu0 %v3171_v21  ;;  %879 = vmatpush1.bf16.msra.mxu1 %v3204_v27 }
 0x13c   :  { %839 = vmatprep.subr.bf16.mxu0 %v3176_v22  ;;  %880 = vmatprep.subr.bf16.mxu1 %v3210_v28 }
 0x13f   :  { %840 = vmatpush1.bf16.msra.mxu0 %v3188_v24  ;;  %881 = vmatpush1.bf16.msra.mxu1 %v3223_v30 }
 0x140   :  { %841 = vmatprep.subr.bf16.mxu0 %v3199_v26  ;;  %882 = vmatprep.subr.bf16.mxu1 %v3229_v31 }
 0x143   :  { %842 = vmatpush1.bf16.msra.mxu0 %v3217_v29  ;;  %883 = vmatpush1.bf16.msra.mxu1 %v3239_v32 }
 0x144   :  { %1137 = vmatprep.subr.bf16.mxu0 %v3052_v0  ;;  %1178 = vmatprep.subr.bf16.mxu1 %v3082_v6 }
 0x1f9   :  { %v551_v39 = vpop.f32.mrb[4].mxu0  ;;  %v592_v40 = vpop.f32.mrb[4].mxu1 }
 0x1fa   :  { %v599_v41 = vadd.f32 %v2528_v37, %v551_v39  ;;  %v553_v42 = vpop.f32.mrb[5].mxu0  ;;  %v594_v43 = vpop.f32.mrb[5].mxu1  ;;  %v601_v50 = vadd.f32 %v2530_v49, %v592_v40  ;;  %v3447_v49 = vld [vmem:[%s3787_s1 + $0x28] ss:$16 sps:$4 sm:$0xff]  }
 0x1fb   :  { %v600_v44 = vadd.f32 %v2529_v38, %v553_v42  ;;  %v555_v45 = vpop.f32.mrb[6].mxu0  ;;  %v596_v46 = vpop.f32.mrb[6].mxu1  ;;  %v602_v52 = vadd.f32 %v2531_v51, %v594_v43  ;;  %v3461_v51 = vld [vmem:[%s3787_s1 + $0x4c] ss:$16 sps:$4 sm:$0xff]  }
 0x1fc   :  { %v2564_v47 = vmul.f32 -1.442695, %v599_v41  ;;  %v556_v0 = vpop.f32.mrb[7].mxu0  ;;  %v597_v48 = vpop.f32.mrb[7].mxu1  ;;  %v2566_v53 = vmul.f32 -1.442695, %v601_v50 }
 0x1fd   :  { %v2565_v6 = vmul.f32 -1.442695, %v600_v44  ;;  %v3408_v44 = vld [vmem:[%s3787_s1 + $0x4] ss:$16 sps:$4 sm:$0xff]   ;;  %v3413_v45 = vld [vmem:[%s3787_s1 + $0xc] ss:$16 sps:$4 sm:$0xff]  }
 0x1fe   :  { %2921 = vpow2.f32 %v2564_v47  ;;  %v3418_v46 = vld [vmem:[%s3787_s1] ss:$16 sps:$4 sm:$0xff]   ;;  %v3423_v47 = vld [vmem:[%s3787_s1 + $0x8] ss:$16 sps:$4 sm:$0xff]   ;;  %v3432_v0 = vld [vmem:[%s3787_s1 + $0x24] ss:$16 sps:$4 sm:$0xff]  }
 0x1ff   :  { %2923 = vpow2.f32 %v2565_v6  ;;  %v3437_v48 = vld [vmem:[%s3787_s1 + $0x2c] ss:$16 sps:$4 sm:$0xff]   ;;  %v3442_v6 = vld [vmem:[%s3787_s1 + $0x20] ss:$16 sps:$4 sm:$0xff]   ;;  %v3456_v50 = vld [vmem:[%s3787_s1 + $0x44] ss:$16 sps:$4 sm:$0xff]  }
 0x200   :  { %2925 = vtanh.f32 %v602_v52  ;;  %v3466_v52 = vld [vmem:[%s3787_s1 + $0x40] ss:$16 sps:$4 sm:$0xff]  }
 0x201   :  { %2927 = vpow2.f32 %v2566_v53  ;;  %v3471_v53 = vld [vmem:[%s3787_s1 + $0x48] ss:$16 sps:$4 sm:$0xff]  }
 0x208   :  { %v2922_v54 = vpop.eup %2921 }
 0x209   :  { %v612_v55 = vadd.f32 1.0, %v2922_v54  ;;  %v2924_v56 = vpop.eup %2923  ;;  %v3480_v54 = vld [vmem:[%s3787_s1 + $0x64] ss:$16 sps:$4 sm:$0xff]  }
 0x20a   :  { %v613_v57 = vadd.f32 1.0, %v2924_v56  ;;  %v2926_v58 = vpop.eup %2925  ;;  %v3490_v56 = vld [vmem:[%s3787_s1 + $0x60] ss:$16 sps:$4 sm:$0xff]  }
 0x20b   :  { %2929 = vrcp.f32 %v612_v55  ;;  %v2928_v59 = vpop.eup %2927  ;;  %v3485_v55 = vld [vmem:[%s3787_s1 + $0x6c] ss:$16 sps:$4 sm:$0xff]  }
 0x20c   :  { %2931 = vrcp.f32 %v613_v57  ;;  %v614_v33 = vadd.f32 1.0, %v2928_v59  ;;  %v3495_v57 = vld [vmem:[%s3787_s1 + $0x68] ss:$16 sps:$4 sm:$0xff]   ;;  %v3509_v59 = vld [vmem:[%s3787_s1 + $0x8c] ss:$16 sps:$4 sm:$0xff]  }
 0x20e   :  { %2933 = vrcp.f32 %v614_v33  ;;  %v3533_v33 = vld [vmem:[%s3787_s1 + $0xa4] ss:$16 sps:$4 sm:$0xff]  }
 0x215   :  { %v2930_v60 = vpop.eup %2929 }
 0x216   :  { %v623_v61 = vmul.f32 %v2930_v60, %v2926_v58  ;;  %v2932_v62 = vpop.eup %2931  ;;  %v3504_v58 = vld [vmem:[%s3787_s1 + $0x84] ss:$16 sps:$4 sm:$0xff]   ;;  %v3514_v60 = vld [vmem:[%s3787_s1 + $0x80] ss:$16 sps:$4 sm:$0xff]  }
 0x217   :  { %v622_v34 = vmul.f32 %v2932_v62, %v3293_v63  ;;  %v3528_v62 = vld [vmem:[%s3787_s1 + $0xa0] ss:$16 sps:$4 sm:$0xff]  }
 0x218   :  { %v2934_v36 = vpop.eup %2933 }
 0x219   :  { %v3346_v35 = vadd.f32 %v623_v61, %v622_v34  ;;  %v3519_v61 = vld [vmem:[%s3787_s1 + $0x88] ss:$16 sps:$4 sm:$0xff]  }
 0x21a   :  { %v3538_v34 = vld [vmem:[%s3787_s1 + $0xa8] ss:$16 sps:$4 sm:$0xff]  }
 0x21b   :  { %2935 = vtanh.f32 %v3346_v35 }
 0x225   :  { %v2936_v37 = vpop.eup %2935 }
 0x226   :  { %v626_v38 = vmul.f32 %v2936_v37, %v2934_v36  ;;  %v3548_v36 = vld [vmem:[%s3787_s1 + $0xc4] ss:$16 sps:$4 sm:$0xff]   ;;  %v3554_v37 = vld [vmem:[%s3787_s1 + $0xcc] ss:$16 sps:$4 sm:$0xff]  }
 0x228   :  { %2567 = vst [vmem:[%s3789_s2 + $0x8] sm:$0xff] %v626_v38  ;;  %v634_v39 = vpack.c.bf16 %v626_v38, %v626_v38  ;;  %v3562_v38 = vld [vmem:[%s3787_s1 + $0xc0] ss:$16 sps:$4 sm:$0xff]  }
 0x22a   :  { %860 = vmatmul.mubr.bf16.vlgmr.msra.gmra.mrb[8].mxu0 %v634_v39  ;;  %901 = vmatmul.mubr.bf16.vlgmr.msra.gmra.mrb[8].mxu1 %v634_v39  ;;  %v3567_v39 = vld [vmem:[%s3787_s1 + $0xc8] ss:$16 sps:$4 sm:$0xff]  }
 0x22b   :  { %1138 = vmatpush1.bf16.msra.mxu0 %v3059_v2  ;;  %1179 = vmatpush1.bf16.msra.mxu1 %v3087_v7  ;;  %v2568_v2 = vld [vmem:[%s3788_s0 + $0x40] sm:$0xff] }
 0x22c   :  { %1139 = vmatprep.subr.bf16.mxu0 %v3065_v3  ;;  %1180 = vmatprep.subr.bf16.mxu1 %v3106_v10  ;;  %v2569_v3 = vld [vmem:[%s3788_s0 + $0x48] sm:$0xff] }
 0x22d   :  { %1169 = vmatprep.mubr.bf16.mxu0 %v3033_v1  ;;  %1210 = vmatprep.mubr.bf16.mxu1 %v3033_v1 }
 0x22f   :  { %1140 = vmatpush1.bf16.msra.mxu0 %v3071_v4  ;;  %1181 = vmatpush1.bf16.msra.mxu1 %v3111_v11 }
 0x230   :  { %1141 = vmatprep.subr.bf16.mxu0 %v3077_v5  ;;  %1182 = vmatprep.subr.bf16.mxu1 %v3128_v14 }
 0x233   :  { %1142 = vmatpush1.bf16.msra.mxu0 %v3093_v8  ;;  %1183 = vmatpush1.bf16.msra.mxu1 %v3135_v15 }
 0x234   :  { %1143 = vmatprep.subr.bf16.mxu0 %v3100_v9  ;;  %1184 = vmatprep.subr.bf16.mxu1 %v3141_v16 }
 0x237   :  { %1144 = vmatpush1.bf16.msra.mxu0 %v3118_v12  ;;  %1185 = vmatpush1.bf16.msra.mxu1 %v3159_v19  ;;  %v2571_v19 = vld [vmem:[%s3788_s0 + $0x58] sm:$0xff] }
 0x238   :  { %1145 = vmatprep.subr.bf16.mxu0 %v3123_v13  ;;  %1186 = vmatprep.subr.bf16.mxu1 %v3165_v20 }
 0x23b   :  { %1146 = vmatpush1.bf16.msra.mxu0 %v3147_v17  ;;  %1187 = vmatpush1.bf16.msra.mxu1 %v3183_v23  ;;  %v2570_v17 = vld [vmem:[%s3788_s0 + $0x50] sm:$0xff] }
 0x23c   :  { %1147 = vmatprep.subr.bf16.mxu0 %v3153_v18  ;;  %1188 = vmatprep.subr.bf16.mxu1 %v3194_v25 }
 0x23f   :  { %1148 = vmatpush1.bf16.msra.mxu0 %v3171_v21  ;;  %1189 = vmatpush1.bf16.msra.mxu1 %v3204_v27 }
 0x240   :  { %1149 = vmatprep.subr.bf16.mxu0 %v3176_v22  ;;  %1190 = vmatprep.subr.bf16.mxu1 %v3210_v28 }
 0x243   :  { %1150 = vmatpush1.bf16.msra.mxu0 %v3188_v24  ;;  %1191 = vmatpush1.bf16.msra.mxu1 %v3223_v30 }
 0x244   :  { %1151 = vmatprep.subr.bf16.mxu0 %v3199_v26  ;;  %1192 = vmatprep.subr.bf16.mxu1 %v3229_v31 }
 0x247   :  { %1152 = vmatpush1.bf16.msra.mxu0 %v3217_v29  ;;  %1193 = vmatpush1.bf16.msra.mxu1 %v3239_v32 }
 0x248   :  { %1447 = vmatprep.subr.bf16.mxu0 %v3408_v44  ;;  %1488 = vmatprep.subr.bf16.mxu1 %v3413_v45 }
 0x2fd   :  { %v861_v4 = vpop.f32.mrb[8].mxu0  ;;  %v902_v5 = vpop.f32.mrb[8].mxu1 }
 0x2fe   :  { %v909_v7 = vadd.f32 %v2568_v2, %v861_v4  ;;  %v863_v8 = vpop.f32.mrb[9].mxu0  ;;  %v904_v9 = vpop.f32.mrb[9].mxu1  ;;  %v911_v18 = vadd.f32 %v2570_v17, %v902_v5  ;;  %v3574_v2 = vld [vmem:[%s3787_s1 + $0xe4] ss:$16 sps:$4 sm:$0xff]   ;;  %v3586_v4 = vld [vmem:[%s3787_s1 + $0xe0] ss:$16 sps:$4 sm:$0xff]  }
 0x2ff   :  { %v910_v10 = vadd.f32 %v2569_v3, %v863_v8  ;;  %v865_v11 = vpop.f32.mrb[10].mxu0  ;;  %v906_v12 = vpop.f32.mrb[10].mxu1  ;;  %v912_v20 = vadd.f32 %v2571_v19, %v904_v9  ;;  %v3579_v3 = vld [vmem:[%s3787_s1 + $0xec] ss:$16 sps:$4 sm:$0xff]   ;;  %v3591_v5 = vld [vmem:[%s3787_s1 + $0xe8] ss:$16 sps:$4 sm:$0xff]  }
 0x300   :  { %v2604_v13 = vmul.f32 -1.442695, %v909_v7  ;;  %v866_v14 = vpop.f32.mrb[11].mxu0  ;;  %v907_v15 = vpop.f32.mrb[11].mxu1  ;;  %v2606_v21 = vmul.f32 -1.442695, %v911_v18 }
 0x301   :  { %v2605_v16 = vmul.f32 -1.442695, %v910_v10  ;;  %v2608_v7 = vld [vmem:[%s3788_s0 + $0x60] sm:$0xff]  ;;  %v2609_v8 = vld [vmem:[%s3788_s0 + $0x68] sm:$0xff] }
 0x302   :  { %2937 = vpow2.f32 %v2604_v13 }
 0x303   :  { %2939 = vpow2.f32 %v2605_v16 }
 0x304   :  { %2941 = vtanh.f32 %v912_v20 }
 0x305   :  { %2943 = vpow2.f32 %v2606_v21  ;;  %v2610_v21 = vld [vmem:[%s3788_s0 + $0x70] sm:$0xff] }
 0x30c   :  { %v2938_v22 = vpop.eup %2937 }
 0x30d   :  { %v922_v23 = vadd.f32 1.0, %v2938_v22  ;;  %v2940_v24 = vpop.eup %2939 }
 0x30e   :  { %v923_v25 = vadd.f32 1.0, %v2940_v24  ;;  %v2942_v26 = vpop.eup %2941 }
 0x30f   :  { %2945 = vrcp.f32 %v922_v23  ;;  %v2944_v27 = vpop.eup %2943  ;;  %v2611_v23 = vld [vmem:[%s3788_s0 + $0x78] sm:$0xff] }
 0x310   :  { %2947 = vrcp.f32 %v923_v25  ;;  %v924_v31 = vadd.f32 1.0, %v2944_v27 }
 0x312   :  { %2949 = vrcp.f32 %v924_v31 }
 0x319   :  { %v2946_v28 = vpop.eup %2945 }
 0x31a   :  { %v933_v29 = vmul.f32 %v2946_v28, %v2942_v26  ;;  %v2948_v30 = vpop.eup %2947 }
 0x31b   :  { %v932_v32 = vmul.f32 %v2948_v30, %v3346_v35  ;;  %v3543_v35 = vld [vmem:[%s3787_s1 + $0xac] ss:$16 sps:$4 sm:$0xff]  }
 0x31c   :  { %v2950_v40 = vpop.eup %2949 }
 0x31d   :  { %v3397_v63 = vadd.f32 %v933_v29, %v932_v32 }
 0x31f   :  { %2951 = vtanh.f32 %v3397_v63 }
 0x329   :  { %v2952_v41 = vpop.eup %2951 }
 0x32a   :  { %v936_v42 = vmul.f32 %v2952_v41, %v2950_v40 }
 0x32c   :  { %2607 = vst [vmem:[%s3789_s2 + $0x10] sm:$0xff] %v936_v42  ;;  %v944_v43 = vpack.c.bf16 %v936_v42, %v936_v42 }
 0x32e   :  { %1170 = vmatmul.mubr.bf16.vlgmr.msra.gmra.mrb[12].mxu0 %v944_v43  ;;  %1211 = vmatmul.mubr.bf16.vlgmr.msra.gmra.mrb[12].mxu1 %v944_v43 }
 0x32f   :  { %1479 = vmatprep.mubr.bf16.mxu0 %v3033_v1  ;;  %1520 = vmatprep.mubr.bf16.mxu1 %v3033_v1 }
 0x330   :  { %1448 = vmatpush1.bf16.msra.mxu0 %v3418_v46  ;;  %1489 = vmatpush1.bf16.msra.mxu1 %v3423_v47 }
 0x331   :  { %1449 = vmatprep.subr.bf16.mxu0 %v3432_v0  ;;  %1490 = vmatprep.subr.bf16.mxu1 %v3437_v48 }
 0x334   :  { %1450 = vmatpush1.bf16.msra.mxu0 %v3442_v6  ;;  %1491 = vmatpush1.bf16.msra.mxu1 %v3447_v49 }
 0x335   :  { %1451 = vmatprep.subr.bf16.mxu0 %v3456_v50  ;;  %1492 = vmatprep.subr.bf16.mxu1 %v3461_v51 }
 0x338   :  { %1452 = vmatpush1.bf16.msra.mxu0 %v3466_v52  ;;  %1493 = vmatpush1.bf16.msra.mxu1 %v3471_v53 }
 0x339   :  { %1453 = vmatprep.subr.bf16.mxu0 %v3480_v54  ;;  %1494 = vmatprep.subr.bf16.mxu1 %v3485_v55 }
 0x33c   :  { %1454 = vmatpush1.bf16.msra.mxu0 %v3490_v56  ;;  %1495 = vmatpush1.bf16.msra.mxu1 %v3495_v57 }
 0x33d   :  { %1455 = vmatprep.subr.bf16.mxu0 %v3504_v58  ;;  %1496 = vmatprep.subr.bf16.mxu1 %v3509_v59 }
 0x340   :  { %1456 = vmatpush1.bf16.msra.mxu0 %v3514_v60  ;;  %1497 = vmatpush1.bf16.msra.mxu1 %v3519_v61 }
 0x341   :  { %1457 = vmatprep.subr.bf16.mxu0 %v3533_v33  ;;  %1498 = vmatprep.subr.bf16.mxu1 %v3543_v35 }
 0x344   :  { %1458 = vmatpush1.bf16.msra.mxu0 %v3528_v62  ;;  %1499 = vmatpush1.bf16.msra.mxu1 %v3538_v34 }
 0x345   :  { %1459 = vmatprep.subr.bf16.mxu0 %v3548_v36  ;;  %1500 = vmatprep.subr.bf16.mxu1 %v3554_v37 }
 0x348   :  { %1460 = vmatpush1.bf16.msra.mxu0 %v3562_v38  ;;  %1501 = vmatpush1.bf16.msra.mxu1 %v3567_v39 }
 0x349   :  { %1461 = vmatprep.subr.bf16.mxu0 %v3574_v2  ;;  %1502 = vmatprep.subr.bf16.mxu1 %v3579_v3 }
 0x34c   :  { %1462 = vmatpush1.bf16.msra.mxu0 %v3586_v4  ;;  %1503 = vmatpush1.bf16.msra.mxu1 %v3591_v5 }
 0x34d   :  { %1757 = vmatprep.subr.bf16.mxu0 %v3408_v44  ;;  %1798 = vmatprep.subr.bf16.mxu1 %v3413_v45 }
 0x401   :  { %v1171_v9 = vpop.f32.mrb[12].mxu0  ;;  %v1212_v10 = vpop.f32.mrb[12].mxu1 }
 0x402   :  { %v1219_v11 = vadd.f32 %v2608_v7, %v1171_v9  ;;  %v1173_v12 = vpop.f32.mrb[13].mxu0  ;;  %v1214_v13 = vpop.f32.mrb[13].mxu1  ;;  %v1221_v22 = vadd.f32 %v2610_v21, %v1212_v10 }
 0x403   :  { %v1220_v14 = vadd.f32 %v2609_v8, %v1173_v12  ;;  %v1175_v15 = vpop.f32.mrb[14].mxu0  ;;  %v1216_v16 = vpop.f32.mrb[14].mxu1  ;;  %v1222_v24 = vadd.f32 %v2611_v23, %v1214_v13  ;;  %v2649_v12 = vld [vmem:[%s3788_s0 + $0x88] sm:$0xff] }
 0x404   :  { %v2644_v17 = vmul.f32 -1.442695, %v1219_v11  ;;  %v1176_v18 = vpop.f32.mrb[15].mxu0  ;;  %v1217_v19 = vpop.f32.mrb[15].mxu1  ;;  %v2646_v25 = vmul.f32 -1.442695, %v1221_v22 }
 0x405   :  { %v2645_v20 = vmul.f32 -1.442695, %v1220_v14 }
 0x406   :  { %2953 = vpow2.f32 %v2644_v17 }
 0x407   :  { %2955 = vpow2.f32 %v2645_v20 }
 0x408   :  { %2957 = vtanh.f32 %v1222_v24 }
 0x409   :  { %2959 = vpow2.f32 %v2646_v25  ;;  %v2650_v25 = vld [vmem:[%s3788_s0 + $0x90] sm:$0xff] }
 0x410   :  { %v2954_v26 = vpop.eup %2953 }
 0x411   :  { %v1232_v27 = vadd.f32 1.0, %v2954_v26  ;;  %v2956_v28 = vpop.eup %2955 }
 0x412   :  { %v1233_v29 = vadd.f32 1.0, %v2956_v28  ;;  %v2958_v30 = vpop.eup %2957 }
 0x413   :  { %2961 = vrcp.f32 %v1232_v27  ;;  %v2960_v31 = vpop.eup %2959  ;;  %v2651_v27 = vld [vmem:[%s3788_s0 + $0x98] sm:$0xff] }
 0x414   :  { %2963 = vrcp.f32 %v1233_v29  ;;  %v1234_v42 = vadd.f32 1.0, %v2960_v31 }
 0x416   :  { %2965 = vrcp.f32 %v1234_v42 }
 0x41d   :  { %v2962_v32 = vpop.eup %2961 }
 0x41e   :  { %v1243_v40 = vmul.f32 %v2962_v32, %v2958_v30  ;;  %v2964_v41 = vpop.eup %2963 }
 0x41f   :  { %v1242_v43 = vmul.f32 %v2964_v41, %v3397_v63  ;;  %v2648_v63 = vld [vmem:[%s3788_s0 + $0x80] sm:$0xff] }
 0x420   :  { %v2966_v8 = vpop.eup %2965 }
 0x421   :  { %v3612_v7 = vadd.f32 %v1243_v40, %v1242_v43 }
 0x423   :  { %2967 = vtanh.f32 %v3612_v7 }
 0x42d   :  { %v2968_v9 = vpop.eup %2967 }
 0x42e   :  { %v1246_v10 = vmul.f32 %v2968_v9, %v2966_v8 }
 0x430   :  { %2647 = vst [vmem:[%s3789_s2 + $0x18] sm:$0xff] %v1246_v10  ;;  %v1254_v11 = vpack.c.bf16 %v1246_v10, %v1246_v10 }
 0x432   :  { %1480 = vmatmul.mubr.bf16.vlgmr.msra.gmra.mrb[16].mxu0 %v1254_v11  ;;  %1521 = vmatmul.mubr.bf16.vlgmr.msra.gmra.mrb[16].mxu1 %v1254_v11 }
 0x433   :  { %1758 = vmatpush1.bf16.msra.mxu0 %v3418_v46  ;;  %1799 = vmatpush1.bf16.msra.mxu1 %v3423_v47 }
 0x434   :  { %1759 = vmatprep.subr.bf16.mxu0 %v3432_v0  ;;  %1800 = vmatprep.subr.bf16.mxu1 %v3437_v48 }
 0x435   :  { %1789 = vmatprep.mubr.bf16.mxu0 %v3033_v1  ;;  %1830 = vmatprep.mubr.bf16.mxu1 %v3033_v1 }
 0x437   :  { %1760 = vmatpush1.bf16.msra.mxu0 %v3442_v6  ;;  %1801 = vmatpush1.bf16.msra.mxu1 %v3447_v49 }
 0x438   :  { %1761 = vmatprep.subr.bf16.mxu0 %v3456_v50  ;;  %1802 = vmatprep.subr.bf16.mxu1 %v3461_v51 }
 0x43b   :  { %1762 = vmatpush1.bf16.msra.mxu0 %v3466_v52  ;;  %1803 = vmatpush1.bf16.msra.mxu1 %v3471_v53 }
 0x43c   :  { %1763 = vmatprep.subr.bf16.mxu0 %v3480_v54  ;;  %1804 = vmatprep.subr.bf16.mxu1 %v3485_v55 }
 0x43f   :  { %1764 = vmatpush1.bf16.msra.mxu0 %v3490_v56  ;;  %1805 = vmatpush1.bf16.msra.mxu1 %v3495_v57 }
 0x440   :  { %1765 = vmatprep.subr.bf16.mxu0 %v3504_v58  ;;  %1806 = vmatprep.subr.bf16.mxu1 %v3509_v59 }
 0x443   :  { %1766 = vmatpush1.bf16.msra.mxu0 %v3514_v60  ;;  %1807 = vmatpush1.bf16.msra.mxu1 %v3519_v61 }
 0x444   :  { %1767 = vmatprep.subr.bf16.mxu0 %v3533_v33  ;;  %1808 = vmatprep.subr.bf16.mxu1 %v3543_v35 }
 0x447   :  { %1768 = vmatpush1.bf16.msra.mxu0 %v3528_v62  ;;  %1809 = vmatpush1.bf16.msra.mxu1 %v3538_v34 }
 0x448   :  { %1769 = vmatprep.subr.bf16.mxu0 %v3548_v36  ;;  %1810 = vmatprep.subr.bf16.mxu1 %v3554_v37 }
 0x44b   :  { %1770 = vmatpush1.bf16.msra.mxu0 %v3562_v38  ;;  %1811 = vmatpush1.bf16.msra.mxu1 %v3567_v39 }
 0x44c   :  { %1771 = vmatprep.subr.bf16.mxu0 %v3574_v2  ;;  %1812 = vmatprep.subr.bf16.mxu1 %v3579_v3 }
 0x44f   :  { %1772 = vmatpush1.bf16.msra.mxu0 %v3586_v4  ;;  %1813 = vmatpush1.bf16.msra.mxu1 %v3591_v5 }
 0x450   :  { %2067 = vmatprep.subr.bf16.mxu0 %v3408_v44  ;;  %2108 = vmatprep.subr.bf16.mxu1 %v3413_v45 }
 0x505   :  { %v1481_v13 = vpop.f32.mrb[16].mxu0  ;;  %v1522_v14 = vpop.f32.mrb[16].mxu1 }
 0x506   :  { %v1529_v15 = vadd.f32 %v2648_v63, %v1481_v13  ;;  %v1483_v16 = vpop.f32.mrb[17].mxu0  ;;  %v1524_v17 = vpop.f32.mrb[17].mxu1  ;;  %v1531_v26 = vadd.f32 %v2650_v25, %v1522_v14 }
 0x507   :  { %v1530_v18 = vadd.f32 %v2649_v12, %v1483_v16  ;;  %v1485_v19 = vpop.f32.mrb[18].mxu0  ;;  %v1526_v20 = vpop.f32.mrb[18].mxu1  ;;  %v1532_v28 = vadd.f32 %v2651_v27, %v1524_v17  ;;  %v2689_v16 = vld [vmem:[%s3788_s0 + $0xa8] sm:$0xff]  ;;  %v2690_v27 = vld [vmem:[%s3788_s0 + $0xb0] sm:$0xff] }
 0x508   :  { %v2684_v21 = vmul.f32 -1.442695, %v1529_v15  ;;  %v1486_v22 = vpop.f32.mrb[19].mxu0  ;;  %v1527_v23 = vpop.f32.mrb[19].mxu1  ;;  %v2686_v29 = vmul.f32 -1.442695, %v1531_v26 }
 0x509   :  { %v2685_v24 = vmul.f32 -1.442695, %v1530_v18 }
 0x50a   :  { %2969 = vpow2.f32 %v2684_v21 }
 0x50b   :  { %2971 = vpow2.f32 %v2685_v24 }
 0x50c   :  { %2973 = vtanh.f32 %v1532_v28 }
 0x50d   :  { %2975 = vpow2.f32 %v2686_v29  ;;  %v2691_v29 = vld [vmem:[%s3788_s0 + $0xb8] sm:$0xff] }
 0x514   :  { %v2970_v30 = vpop.eup %2969 }
 0x515   :  { %v1542_v31 = vadd.f32 1.0, %v2970_v30  ;;  %v2972_v32 = vpop.eup %2971 }
 0x516   :  { %v1543_v40 = vadd.f32 1.0, %v2972_v32  ;;  %v2974_v41 = vpop.eup %2973 }
 0x517   :  { %2977 = vrcp.f32 %v1542_v31  ;;  %v2976_v42 = vpop.eup %2975 }
 0x518   :  { %2979 = vrcp.f32 %v1543_v40  ;;  %v1544_v10 = vadd.f32 1.0, %v2976_v42 }
 0x51a   :  { %2981 = vrcp.f32 %v1544_v10 }
 0x521   :  { %v2978_v43 = vpop.eup %2977 }
 0x522   :  { %v1553_v8 = vmul.f32 %v2978_v43, %v2974_v41  ;;  %v2980_v9 = vpop.eup %2979 }
 0x523   :  { %v1552_v11 = vmul.f32 %v2980_v9, %v3612_v7  ;;  %v2688_v7 = vld [vmem:[%s3788_s0 + $0xa0] sm:$0xff] }
 0x524   :  { %v2982_v12 = vpop.eup %2981 }
 0x525   :  { %v3665_v63 = vadd.f32 %v1553_v8, %v1552_v11 }
 0x527   :  { %2983 = vtanh.f32 %v3665_v63 }
 0x531   :  { %v2984_v13 = vpop.eup %2983 }
 0x532   :  { %v1556_v14 = vmul.f32 %v2984_v13, %v2982_v12 }
 0x534   :  { %2687 = vst [vmem:[%s3789_s2 + $0x20] sm:$0xff] %v1556_v14  ;;  %v1564_v15 = vpack.c.bf16 %v1556_v14, %v1556_v14 }
 0x536   :  { %1790 = vmatmul.mubr.bf16.vlgmr.msra.gmra.mrb[20].mxu0 %v1564_v15  ;;  %1831 = vmatmul.mubr.bf16.vlgmr.msra.gmra.mrb[20].mxu1 %v1564_v15 }
 0x537   :  { %2068 = vmatpush1.bf16.msra.mxu0 %v3418_v46  ;;  %2109 = vmatpush1.bf16.msra.mxu1 %v3423_v47 }
 0x538   :  { %2069 = vmatprep.subr.bf16.mxu0 %v3432_v0  ;;  %2110 = vmatprep.subr.bf16.mxu1 %v3437_v48 }
 0x539   :  { %2099 = vmatprep.mubr.bf16.mxu0 %v3033_v1  ;;  %2140 = vmatprep.mubr.bf16.mxu1 %v3033_v1 }
 0x53b   :  { %2070 = vmatpush1.bf16.msra.mxu0 %v3442_v6  ;;  %2111 = vmatpush1.bf16.msra.mxu1 %v3447_v49 }
 0x53c   :  { %2071 = vmatprep.subr.bf16.mxu0 %v3456_v50  ;;  %2112 = vmatprep.subr.bf16.mxu1 %v3461_v51 }
 0x53f   :  { %2072 = vmatpush1.bf16.msra.mxu0 %v3466_v52  ;;  %2113 = vmatpush1.bf16.msra.mxu1 %v3471_v53 }
 0x540   :  { %2073 = vmatprep.subr.bf16.mxu0 %v3480_v54  ;;  %2114 = vmatprep.subr.bf16.mxu1 %v3485_v55 }
 0x543   :  { %2074 = vmatpush1.bf16.msra.mxu0 %v3490_v56  ;;  %2115 = vmatpush1.bf16.msra.mxu1 %v3495_v57 }
 0x544   :  { %2075 = vmatprep.subr.bf16.mxu0 %v3504_v58  ;;  %2116 = vmatprep.subr.bf16.mxu1 %v3509_v59 }
 0x547   :  { %2076 = vmatpush1.bf16.msra.mxu0 %v3514_v60  ;;  %2117 = vmatpush1.bf16.msra.mxu1 %v3519_v61 }
 0x548   :  { %2077 = vmatprep.subr.bf16.mxu0 %v3533_v33  ;;  %2118 = vmatprep.subr.bf16.mxu1 %v3543_v35 }
 0x54b   :  { %2078 = vmatpush1.bf16.msra.mxu0 %v3528_v62  ;;  %2119 = vmatpush1.bf16.msra.mxu1 %v3538_v34 }
 0x54c   :  { %2079 = vmatprep.subr.bf16.mxu0 %v3548_v36  ;;  %2120 = vmatprep.subr.bf16.mxu1 %v3554_v37 }
 0x54f   :  { %2080 = vmatpush1.bf16.msra.mxu0 %v3562_v38  ;;  %2121 = vmatpush1.bf16.msra.mxu1 %v3567_v39 }
 0x550   :  { %2081 = vmatprep.subr.bf16.mxu0 %v3574_v2  ;;  %2122 = vmatprep.subr.bf16.mxu1 %v3579_v3 }
 0x553   :  { %2082 = vmatpush1.bf16.msra.mxu0 %v3586_v4  ;;  %2123 = vmatpush1.bf16.msra.mxu1 %v3591_v5 }
 0x554   :  { %2377 = vmatprep.subr.bf16.mxu0 %v3408_v44  ;;  %2418 = vmatprep.subr.bf16.mxu1 %v3413_v45 }
 0x609   :  { %v1791_v17 = vpop.f32.mrb[20].mxu0  ;;  %v1832_v18 = vpop.f32.mrb[20].mxu1 }
 0x60a   :  { %v1839_v19 = vadd.f32 %v2688_v7, %v1791_v17  ;;  %v1793_v20 = vpop.f32.mrb[21].mxu0  ;;  %v1834_v21 = vpop.f32.mrb[21].mxu1  ;;  %v1841_v28 = vadd.f32 %v2690_v27, %v1832_v18 }
 0x60b   :  { %v1840_v22 = vadd.f32 %v2689_v16, %v1793_v20  ;;  %v1795_v23 = vpop.f32.mrb[22].mxu0  ;;  %v1836_v24 = vpop.f32.mrb[22].mxu1  ;;  %v1842_v30 = vadd.f32 %v2691_v29, %v1834_v21  ;;  %v2768_v21 = vld [vmem:[%s3788_s0 + $0xe0] sm:$0xff] }
 0x60c   :  { %v2724_v25 = vmul.f32 -1.442695, %v1839_v19  ;;  %v1796_v44 = vpop.f32.mrb[23].mxu0  ;;  %v1837_v26 = vpop.f32.mrb[23].mxu1  ;;  %v2726_v31 = vmul.f32 -1.442695, %v1841_v28 }
 0x60d   :  { %v2725_v45 = vmul.f32 -1.442695, %v1840_v22  ;;  %v2769_v22 = vld [vmem:[%s3788_s0 + $0xe8] sm:$0xff] }
 0x60e   :  { %2985 = vpow2.f32 %v2724_v25 }
 0x60f   :  { %2987 = vpow2.f32 %v2725_v45 }
 0x610   :  { %2989 = vtanh.f32 %v1842_v30 }
 0x611   :  { %2991 = vpow2.f32 %v2726_v31 }
 0x618   :  { %v2986_v32 = vpop.eup %2985 }
 0x619   :  { %v1852_v40 = vadd.f32 1.0, %v2986_v32  ;;  %v2988_v41 = vpop.eup %2987 }
 0x61a   :  { %v1853_v42 = vadd.f32 1.0, %v2988_v41  ;;  %v2990_v43 = vpop.eup %2989 }
 0x61b   :  { %2993 = vrcp.f32 %v1852_v40  ;;  %v2992_v8 = vpop.eup %2991  ;;  %v2770_v40 = vld [vmem:[%s3788_s0 + $0xf0] sm:$0xff] }
 0x61c   :  { %2995 = vrcp.f32 %v1853_v42  ;;  %v1854_v12 = vadd.f32 1.0, %v2992_v8  ;;  %v2771_v42 = vld [vmem:[%s3788_s0 + $0xf8] sm:$0xff] }
 0x61e   :  { %2997 = vrcp.f32 %v1854_v12 }
 0x625   :  { %v2994_v9 = vpop.eup %2993 }
 0x626   :  { %v1863_v10 = vmul.f32 %v2994_v9, %v2990_v43  ;;  %v2996_v11 = vpop.eup %2995 }
 0x627   :  { %v1862_v13 = vmul.f32 %v2996_v11, %v3665_v63 }
 0x628   :  { %v2998_v15 = vpop.eup %2997 }
 0x629   :  { %v3718_v14 = vadd.f32 %v1863_v10, %v1862_v13 }
 0x62b   :  { %2999 = vtanh.f32 %v3718_v14 }
 0x635   :  { %v3000_v7 = vpop.eup %2999 }
 0x636   :  { %v1866_v16 = vmul.f32 %v3000_v7, %v2998_v15 }
 0x638   :  { %2727 = vst [vmem:[%s3789_s2 + $0x28] sm:$0xff] %v1866_v16  ;;  %v1874_v17 = vpack.c.bf16 %v1866_v16, %v1866_v16 }
 0x63a   :  { %2100 = vmatmul.mubr.bf16.vlgmr.msra.gmra.mrb[24].mxu0 %v1874_v17  ;;  %2141 = vmatmul.mubr.bf16.vlgmr.msra.gmra.mrb[24].mxu1 %v1874_v17 }
 0x63b   :  { %2378 = vmatpush1.bf16.msra.mxu0 %v3418_v46  ;;  %2419 = vmatpush1.bf16.msra.mxu1 %v3423_v47  ;;  %v2729_v46 = vld [vmem:[%s3788_s0 + $0xc8] sm:$0xff] }
 0x63c   :  { %2379 = vmatprep.subr.bf16.mxu0 %v3432_v0  ;;  %2420 = vmatprep.subr.bf16.mxu1 %v3437_v48 }
 0x63d   :  { %2409 = vmatprep.mubr.bf16.mxu0 %v3033_v1  ;;  %2450 = vmatprep.mubr.bf16.mxu1 %v3033_v1  ;;  %v2728_v1 = vld [vmem:[%s3788_s0 + $0xc0] sm:$0xff] }
 0x63f   :  { %2380 = vmatpush1.bf16.msra.mxu0 %v3442_v6  ;;  %2421 = vmatpush1.bf16.msra.mxu1 %v3447_v49 }
 0x640   :  { %2381 = vmatprep.subr.bf16.mxu0 %v3456_v50  ;;  %2422 = vmatprep.subr.bf16.mxu1 %v3461_v51 }
 0x643   :  { %2382 = vmatpush1.bf16.msra.mxu0 %v3466_v52  ;;  %2423 = vmatpush1.bf16.msra.mxu1 %v3471_v53 }
 0x644   :  { %2383 = vmatprep.subr.bf16.mxu0 %v3480_v54  ;;  %2424 = vmatprep.subr.bf16.mxu1 %v3485_v55 }
 0x647   :  { %2384 = vmatpush1.bf16.msra.mxu0 %v3490_v56  ;;  %2425 = vmatpush1.bf16.msra.mxu1 %v3495_v57  ;;  %v2730_v57 = vld [vmem:[%s3788_s0 + $0xd0] sm:$0xff] }
 0x648   :  { %2385 = vmatprep.subr.bf16.mxu0 %v3504_v58  ;;  %2426 = vmatprep.subr.bf16.mxu1 %v3509_v59  ;;  %v2731_v59 = vld [vmem:[%s3788_s0 + $0xd8] sm:$0xff] }
 0x64b   :  { %2386 = vmatpush1.bf16.msra.mxu0 %v3514_v60  ;;  %2427 = vmatpush1.bf16.msra.mxu1 %v3519_v61 }
 0x64c   :  { %2387 = vmatprep.subr.bf16.mxu0 %v3533_v33  ;;  %2428 = vmatprep.subr.bf16.mxu1 %v3543_v35 }
 0x64f   :  { %2388 = vmatpush1.bf16.msra.mxu0 %v3528_v62  ;;  %2429 = vmatpush1.bf16.msra.mxu1 %v3538_v34 }
 0x650   :  { %2389 = vmatprep.subr.bf16.mxu0 %v3548_v36  ;;  %2430 = vmatprep.subr.bf16.mxu1 %v3554_v37 }
 0x653   :  { %2390 = vmatpush1.bf16.msra.mxu0 %v3562_v38  ;;  %2431 = vmatpush1.bf16.msra.mxu1 %v3567_v39 }
 0x654   :  { %2391 = vmatprep.subr.bf16.mxu0 %v3574_v2  ;;  %2432 = vmatprep.subr.bf16.mxu1 %v3579_v3 }
 0x657   :  { %2392 = vmatpush1.bf16.msra.mxu0 %v3586_v4  ;;  %2433 = vmatpush1.bf16.msra.mxu1 %v3591_v5 }
 0x70d   :  { %v2101_v47 = vpop.f32.mrb[24].mxu0  ;;  %v2142_v0 = vpop.f32.mrb[24].mxu1 }
 0x70e   :  { %v2149_v48 = vadd.f32 %v2728_v1, %v2101_v47  ;;  %v2103_v6 = vpop.f32.mrb[25].mxu0  ;;  %v2144_v49 = vpop.f32.mrb[25].mxu1  ;;  %v2151_v58 = vadd.f32 %v2730_v57, %v2142_v0 }
 0x70f   :  { %v2150_v50 = vadd.f32 %v2729_v46, %v2103_v6  ;;  %v2105_v51 = vpop.f32.mrb[26].mxu0  ;;  %v2146_v52 = vpop.f32.mrb[26].mxu1  ;;  %v2152_v60 = vadd.f32 %v2731_v59, %v2144_v49 }
 0x710   :  { %v2764_v53 = vmul.f32 -1.442695, %v2149_v48  ;;  %v2106_v54 = vpop.f32.mrb[27].mxu0  ;;  %v2147_v55 = vpop.f32.mrb[27].mxu1  ;;  %v2766_v61 = vmul.f32 -1.442695, %v2151_v58 }
 0x711   :  { %v2765_v56 = vmul.f32 -1.442695, %v2150_v50 }
 0x712   :  { %3001 = vpow2.f32 %v2764_v53 }
 0x713   :  { %3003 = vpow2.f32 %v2765_v56 }
 0x714   :  { %3005 = vtanh.f32 %v2152_v60 }
 0x715   :  { %3007 = vpow2.f32 %v2766_v61 }
 0x71c   :  { %v3002_v62 = vpop.eup %3001 }
 0x71d   :  { %v2162_v33 = vadd.f32 1.0, %v3002_v62  ;;  %v3004_v34 = vpop.eup %3003 }
 0x71e   :  { %v2163_v35 = vadd.f32 1.0, %v3004_v34  ;;  %v3006_v36 = vpop.eup %3005 }
 0x71f   :  { %3009 = vrcp.f32 %v2162_v33  ;;  %v3008_v37 = vpop.eup %3007 }
 0x720   :  { %3011 = vrcp.f32 %v2163_v35  ;;  %v2164_v3 = vadd.f32 1.0, %v3008_v37 }
 0x722   :  { %3013 = vrcp.f32 %v2164_v3 }
 0x729   :  { %v3010_v38 = vpop.eup %3009 }
 0x72a   :  { %v2173_v39 = vmul.f32 %v3010_v38, %v3006_v36  ;;  %v3012_v2 = vpop.eup %3011 }
 0x72b   :  { %v2172_v4 = vmul.f32 %v3012_v2, %v3718_v14 }
 0x72c   :  { %v3014_v63 = vpop.eup %3013 }
 0x72d   :  { %v2174_v5 = vadd.f32 %v2173_v39, %v2172_v4 }
 0x72f   :  { %3015 = vtanh.f32 %v2174_v5 }
 0x739   :  { %v3016_v18 = vpop.eup %3015 }
 0x73a   :  { %v2176_v19 = vmul.f32 %v3016_v18, %v3014_v63 }
 0x73c   :  { %2767 = vst [vmem:[%s3789_s2 + $0x30] sm:$0xff] %v2176_v19  ;;  %v2184_v20 = vpack.c.bf16 %v2176_v19, %v2176_v19 }
 0x73e   :  { %2410 = vmatmul.mubr.bf16.vlgmr.msra.gmra.mrb[28].mxu0 %v2184_v20  ;;  %2451 = vmatmul.mubr.bf16.vlgmr.msra.gmra.mrb[28].mxu1 %v2184_v20 }
 0x811   :  { %v2411_v23 = vpop.f32.mrb[28].mxu0  ;;  %v2452_v24 = vpop.f32.mrb[28].mxu1 }
 0x812   :  { %v2459_v25 = vadd.f32 %v2768_v21, %v2411_v23  ;;  %v2413_v44 = vpop.f32.mrb[29].mxu0  ;;  %v2454_v26 = vpop.f32.mrb[29].mxu1  ;;  %v2461_v41 = vadd.f32 %v2770_v40, %v2452_v24 }
 0x813   :  { %v2460_v45 = vadd.f32 %v2769_v22, %v2413_v44  ;;  %v2415_v27 = vpop.f32.mrb[30].mxu0  ;;  %v2456_v28 = vpop.f32.mrb[30].mxu1  ;;  %v2462_v43 = vadd.f32 %v2771_v42, %v2454_v26 }
 0x814   :  { %v2804_v29 = vmul.f32 -1.442695, %v2459_v25  ;;  %v2416_v30 = vpop.f32.mrb[31].mxu0  ;;  %v2457_v31 = vpop.f32.mrb[31].mxu1  ;;  %v2806_v8 = vmul.f32 -1.442695, %v2461_v41 }
 0x815   :  { %v2805_v32 = vmul.f32 -1.442695, %v2460_v45 }
 0x816   :  { %3017 = vpow2.f32 %v2804_v29 }
 0x817   :  { %3019 = vpow2.f32 %v2805_v32 }
 0x818   :  { %3021 = vtanh.f32 %v2462_v43 }
 0x819   :  { %3023 = vpow2.f32 %v2806_v8 }
 0x820   :  { %v3018_v9 = vpop.eup %3017 }
 0x821   :  { %v2472_v10 = vadd.f32 1.0, %v3018_v9  ;;  %v3020_v11 = vpop.eup %3019 }
 0x822   :  { %v2473_v12 = vadd.f32 1.0, %v3020_v11  ;;  %v3022_v13 = vpop.eup %3021 }
 0x823   :  { %3025 = vrcp.f32 %v2472_v10  ;;  %v3024_v14 = vpop.eup %3023 }
 0x824   :  { %3027 = vrcp.f32 %v2473_v12  ;;  %v2474_v17 = vadd.f32 1.0, %v3024_v14 }
 0x826   :  { %3029 = vrcp.f32 %v2474_v17 }
 0x82d   :  { %v3026_v15 = vpop.eup %3025 }
 0x82e   :  { %v2483_v7 = vmul.f32 %v3026_v15, %v3022_v13  ;;  %v3028_v16 = vpop.eup %3027 }
 0x82f   :  { %v2482_v1 = vmul.f32 %v3028_v16, %v2174_v5 }
 0x830   :  { %v3030_v47 = vpop.eup %3029 }
 0x831   :  { %v2484_v46 = vadd.f32 %v2483_v7, %v2482_v1 }
 0x833   :  { %3031 = vtanh.f32 %v2484_v46 }
 0x83d   :  { %v3032_v0 = vpop.eup %3031 }
 0x83e   :  { %v2486_v48 = vmul.f32 %v3032_v0, %v3030_v47 }
 0x840   :  { %2807 = vst [vmem:[%s3789_s2 + $0x38] sm:$0xff] %v2486_v48 }

</bundles_post_ra>
